<compile_context>
chip_gen: v5e
topology: v5e:2x2
jax: 0.10.0
libtpu: 0.0.40
codegen_flags: <defaults>
</compile_context>

<pallas_src>
import functools

import jax
import jax.numpy as jnp
from jax.experimental import pallas as pl
from jax.experimental.pallas import tpu as pltpu


def _conformer_conv_kernel(
    x_prev_ref,   # (1, H, C)  f32  halo rows just before this tile (clamped at t==0)
    x_cur_ref,    # (1, tT, C) f32  current time tile (residual source)
    x_next_ref,   # (1, H, C)  f32  halo rows just after this tile (clamped at last)
    ln_g_ref,     # (1, C)  f32     LayerNorm gamma
    ln_b_ref,     # (1, C)  f32     LayerNorm beta
    w1_ref,       # (C, 2C) bf16    pointwise conv1 weight, [value | gate] halves
    b1_ref,       # (1, 2C) f32
    tc_w_ref,     # (K*C, C) bf16   time conv weight, im2col layout (tap-major rows)
    tc_b_ref,     # (1, C)  f32
    bn_s_ref,     # (1, C)  f32     folded BatchNorm scale
    bn_o_ref,     # (1, C)  f32     folded BatchNorm offset
    w2_ref,       # (C, C)  bf16    pointwise conv2 weight
    b2_ref,       # (1, C)  f32
    o_ref,        # (1, tT, C)      output tile
    *,
    seq_len, t_tile, pad, n_taps, halo,
):
    tT, P, K, H = t_tile, pad, n_taps, halo
    t = pl.program_id(1)

    x_cur = x_cur_ref[0]                                 # (tT, C) f32
    C = x_cur.shape[-1]
    W = tT + 2 * P

    # ---- assemble the haloed window: global rows [t*tT - P, t*tT + tT + P) --
    if P > 0:
        prev = x_prev_ref[0]                             # (H, C)
        nxt = x_next_ref[0]                              # (H, C)
        xw = jnp.concatenate([prev[H - P:, :], x_cur, nxt[:P, :]], axis=0)
    else:
        xw = x_cur                                       # (W, C) f32

    # ---- LayerNorm over channels (f32, eps = 1e-5), one-pass statistics ----
    mu = jnp.mean(xw, axis=-1, keepdims=True)
    msq = jnp.mean(xw * xw, axis=-1, keepdims=True)
    var = msq - mu * mu
    h = (xw - mu) * jax.lax.rsqrt(var + 1e-5)
    h = h * ln_g_ref[...] + ln_b_ref[...]

    # ---- pointwise conv1 (C -> 2C) as one matmul, lane-128 split for GLU ----
    ag = jnp.dot(h.astype(jnp.bfloat16), w1_ref[...],
                 preferred_element_type=jnp.float32) + b1_ref[...]   # (W, 2C)
    y = ag[:, :C] * jax.nn.sigmoid(ag[:, C:])                         # (W, C) f32

    # Rows outside [0, seq_len) must contribute zero: this is exactly the
    # Conv1d zero padding at sequence boundaries, and it also masks the
    # clamped halo blocks and the padded tail of the last tile.
    rows = t * tT - P + jax.lax.broadcasted_iota(jnp.int32, (W, 1), 0)
    y = jnp.where((rows >= 0) & (rows < seq_len), y, 0.0)

    # ---- time conv ('same' padding), im2col: one (tT, K*C) @ (K*C, C) ----
    cols = jnp.concatenate([y[k:k + tT, :] for k in range(K)], axis=-1)
    acc = jnp.dot(cols.astype(jnp.bfloat16), tc_w_ref[...],
                  preferred_element_type=jnp.float32) + tc_b_ref[...]  # (tT, C)

    # ---- BatchNorm (eval mode, pre-folded scale/offset) + SiLU ----
    z = acc * bn_s_ref[...] + bn_o_ref[...]
    z = z * jax.nn.sigmoid(z)

    # ---- pointwise conv2 + Dropout(identity in eval) + residual ----
    out = jnp.dot(z.astype(jnp.bfloat16), w2_ref[...],
                  preferred_element_type=jnp.float32) + b2_ref[...]
    o_ref[0] = (out + x_cur).astype(o_ref.dtype)


def conformer_convolution(x, params, *, t_tile=256):
    """x: (B, T, C) float32, C a multiple of 128. Returns (B, T, C)."""
    B, T, C = x.shape
    assert C % 128 == 0, "channels must be lane-dense (multiple of 128)"
    K = params["tc_w"].shape[0]
    assert K % 2 == 1, "'same' padding with (K-1)//2 needs an odd kernel"
    P = (K - 1) // 2

    # Halo block height: sublane-aligned, big enough to hold P rows.
    H = ((max(P, 1) + 7) // 8) * 8
    # Effective tile: clamp to the sequence, keep it a multiple of H so halo
    # block indices stay in whole blocks.
    t_eff = min(t_tile, ((T + 7) // 8) * 8)
    t_eff = max(H, ((t_eff + H - 1) // H) * H)

    nt = -(-T // t_eff)
    T_core = nt * t_eff
    x_core = x if T_core == T else jnp.pad(x, ((0, 0), (0, T_core - T), (0, 0)))
    n_hblk = T_core // H
    tpH = t_eff // H

    # Fold eval-mode BatchNorm into a single scale/offset; cast matmul weights
    # to bf16 once; merge the two GLU halves; im2col-reshape the time conv.
    bn_scale = (params["bn_g"] * jax.lax.rsqrt(params["bn_v"] + 1e-5)).astype(jnp.float32)
    bn_shift = (params["bn_b"] - params["bn_m"] * bn_scale).astype(jnp.float32)
    w1 = jnp.concatenate([params["pw1_wa"], params["pw1_wb"]], axis=1).astype(jnp.bfloat16)
    b1 = jnp.concatenate([params["pw1_ba"], params["pw1_bb"]], axis=1).astype(jnp.float32)
    tcw = params["tc_w"].reshape(K * C, C).astype(jnp.bfloat16)   # tap-major rows
    w2 = params["pw2_w"].astype(jnp.bfloat16)

    x_blk = (1, t_eff, C)
    halo_blk = (1, H, C)

    def vec_spec(n):
        return pl.BlockSpec((1, n), lambda b, t: (0, 0))

    def const_spec(shape):
        zeros = (0,) * len(shape)
        return pl.BlockSpec(shape, lambda b, t, zeros=zeros: zeros)

    in_specs = [
        # prev halo: rows [t*tT - H, t*tT), clamped to block 0 (masked in-kernel)
        pl.BlockSpec(halo_blk, lambda b, t: (b, jnp.maximum(t * tpH - 1, 0), 0)),
        # current tile
        pl.BlockSpec(x_blk, lambda b, t: (b, t, 0)),
        # next halo: rows [(t+1)*tT, (t+1)*tT + H), clamped to last block
        pl.BlockSpec(halo_blk, lambda b, t: (b, jnp.minimum((t + 1) * tpH, n_hblk - 1), 0)),
        vec_spec(C), vec_spec(C),             # ln_g, ln_b
        const_spec((C, 2 * C)), vec_spec(2 * C),   # w1, b1
        const_spec((K * C, C)), vec_spec(C),       # tc_w (im2col), tc_b
        vec_spec(C), vec_spec(C),             # bn_scale, bn_shift
        const_spec((C, C)), vec_spec(C),      # w2, b2
    ]

    grid_spec = pltpu.PrefetchScalarGridSpec(
        num_scalar_prefetch=0,
        grid=(B, nt),
        in_specs=in_specs,
        out_specs=pl.BlockSpec(x_blk, lambda b, t: (b, t, 0)),
    )

    # Per-step VMEM budget: double-buffered x tile + halos + output + weights,
    # plus in-kernel value intermediates; generous margin, bounded for v7x.
    blk_bytes = t_eff * C * 4
    halo_bytes = H * C * 4
    weight_bytes = (3 + K) * C * C * 2            # bf16 matmul weights
    W_rows = t_eff + 2 * P
    work_bytes = (6 * W_rows * C * 4              # xw/h/ag/y f32 intermediates
                  + t_eff * K * C * 4             # im2col operand
                  + 3 * t_eff * C * 4)            # acc/z/out
    est = (2 * blk_bytes + 2 * 2 * halo_bytes + 2 * blk_bytes
           + 2 * weight_bytes + 16 * C * 4 + work_bytes)
    vmem_limit = int(min(max(2 * est, 32 * 1024 * 1024), 48 * 1024 * 1024))

    cost = pl.CostEstimate(
        flops=2 * B * T_core * C * C * (K + 3),
        transcendentals=2 * B * T_core * C,
        bytes_accessed=(B * nt * (t_eff + 2 * H) * C * 4   # x tile + halo reads
                        + B * T_core * C * 4               # output writes
                        + weight_bytes),
    )

    kernel = functools.partial(
        _conformer_conv_kernel,
        seq_len=T, t_tile=t_eff, pad=P, n_taps=K, halo=H)

    out = pl.pallas_call(
        kernel,
        out_shape=jax.ShapeDtypeStruct((B, T_core, C), x.dtype),
        grid_spec=grid_spec,
        compiler_params=pltpu.CompilerParams(
            dimension_semantics=("parallel", "parallel"),
            vmem_limit_bytes=vmem_limit),
        cost_estimate=cost,
    )(
        x_core, x_core, x_core,
        params["ln_g"], params["ln_b"],
        w1, b1,
        tcw, params["tc_b"],
        bn_scale, bn_shift,
        w2, params["pw2_b"],
    )
    return out if T_core == T else out[:, :T, :]


def init_params(key, input_dim, expansion_factor=2, kernel_size=7):
    assert expansion_factor == 2, "GLU output must equal input_dim => expansion_factor == 2"
    C, K = input_dim, kernel_size
    ks = jax.random.split(key, 12)
    s = 0.05
    f32 = jnp.float32
    return {
        # LayerNorm
        "ln_g": jnp.ones((1, C), f32),
        "ln_b": jnp.zeros((1, C), f32),
        # Pointwise conv1 (C -> 2C): stored as the two GLU halves, (C_in, C_out)
        "pw1_wa": (jax.random.normal(ks[0], (C, C)) * s).astype(f32),
        "pw1_ba": (jax.random.normal(ks[1], (1, C)) * s).astype(f32),
        "pw1_wb": (jax.random.normal(ks[2], (C, C)) * s).astype(f32),
        "pw1_bb": (jax.random.normal(ks[3], (1, C)) * s).astype(f32),
        # Dense time conv: PyTorch weight (C, C, K) -> stored as (K, C_in, C_out)
        "tc_w": (jax.random.normal(ks[4], (K, C, C)) * s).astype(f32),
        "tc_b": (jax.random.normal(ks[5], (1, C)) * s).astype(f32),
        # BatchNorm (eval-mode running stats)
        "bn_g": (1.0 + 0.1 * jax.random.normal(ks[6], (1, C))).astype(f32),
        "bn_b": (0.1 * jax.random.normal(ks[7], (1, C))).astype(f32),
        "bn_m": (0.1 * jax.random.normal(ks[8], (1, C))).astype(f32),
        "bn_v": (1.0 + 0.1 * jax.random.uniform(ks[9], (1, C))).astype(f32),
        # Pointwise conv2 (C -> C), stored (C_in, C_out)
        "pw2_w": (jax.random.normal(ks[10], (C, C)) * s).astype(f32),
        "pw2_b": (jax.random.normal(ks[11], (1, C)) * s).astype(f32),
    }


def _reference(x, params):
    """Pure-JAX f32 reference of the eval-mode module forward."""
    eps = 1e-5
    mu = jnp.mean(x, axis=-1, keepdims=True)
    var = jnp.mean(jnp.square(x - mu), axis=-1, keepdims=True)
    h = (x - mu) * jax.lax.rsqrt(var + eps) * params["ln_g"] + params["ln_b"]
    a = jnp.einsum("btc,cd->btd", h, params["pw1_wa"]) + params["pw1_ba"]
    g = jnp.einsum("btc,cd->btd", h, params["pw1_wb"]) + params["pw1_bb"]
    y = a * jax.nn.sigmoid(g)
    K = params["tc_w"].shape[0]
    P = (K - 1) // 2
    T = x.shape[1]
    ypad = jnp.pad(y, ((0, 0), (P, P), (0, 0)))
    acc = sum(jnp.einsum("btc,cd->btd", ypad[:, k:k + T, :], params["tc_w"][k])
              for k in range(K)) + params["tc_b"]
    scale = params["bn_g"] * jax.lax.rsqrt(params["bn_v"] + eps)
    z = acc * scale + (params["bn_b"] - params["bn_m"] * scale)
    z = z * jax.nn.sigmoid(z)
    out = jnp.einsum("btc,cd->btd", z, params["pw2_w"]) + params["pw2_b"]
    return out + x


if __name__ == "__main__":
    # Small shapes consistent with the module: (B, T, C), lane-dense C.
    # T deliberately not a multiple of the tile; t_tile=32 gives 3 time tiles
    # so both halo-clamp paths and the padded tail are exercised.
    B, T, C = 2, 72, 128
    kernel_size = 7           # odd kernel, 'same' padding = (K-1)//2

    key = jax.random.PRNGKey(0)
    k_x, k_p = jax.random.split(key)
    x = jax.random.normal(k_x, (B, T, C), dtype=jnp.float32)
    params = init_params(k_p, C, expansion_factor=2, kernel_size=kernel_size)

    out = conformer_convolution(x, params, t_tile=32)
    out = jax.block_until_ready(out)
    assert out.shape == (B, T, C) and out.dtype == jnp.float32

    ref = _reference(x, params)
    err = float(jnp.max(jnp.abs(out - ref)))
    assert err < 5e-2, f"max abs error vs reference too large: {err}"
    print("KERNEL_OK")
</pallas_src>

<mosaic_0001>
module attributes {stable_mosaic.version = 11 : i64} {
  func.func @_conformer_conv_kernel(%arg0: i32, %arg1: i32, %arg2: memref<1x8x128xf32, #tpu.memory_space<vmem>>, %arg3: memref<1x32x128xf32, #tpu.memory_space<vmem>>, %arg4: memref<1x8x128xf32, #tpu.memory_space<vmem>>, %arg5: memref<1x128xf32, #tpu.memory_space<vmem>>, %arg6: memref<1x128xf32, #tpu.memory_space<vmem>>, %arg7: memref<128x256xbf16, #tpu.memory_space<vmem>>, %arg8: memref<1x256xf32, #tpu.memory_space<vmem>>, %arg9: memref<896x128xbf16, #tpu.memory_space<vmem>>, %arg10: memref<1x128xf32, #tpu.memory_space<vmem>>, %arg11: memref<1x128xf32, #tpu.memory_space<vmem>>, %arg12: memref<1x128xf32, #tpu.memory_space<vmem>>, %arg13: memref<128x128xbf16, #tpu.memory_space<vmem>>, %arg14: memref<1x128xf32, #tpu.memory_space<vmem>>, %arg15: memref<1x32x128xf32, #tpu.memory_space<vmem>>) attributes {dimension_semantics = [#tpu.dimension_semantics<parallel>, #tpu.dimension_semantics<parallel>], iteration_bounds = array<i64: 2, 3>, scalar_prefetch = 0 : i64, scratch_operands = 0 : i64, tpu.core_type = #tpu.core_type<tc>, window_params = [{transform_indices = @transform_0, window_bounds = array<i64: 1, 8, 128>}, {transform_indices = @transform_1, window_bounds = array<i64: 1, 32, 128>}, {transform_indices = @transform_2, window_bounds = array<i64: 1, 8, 128>}, {pipeline_mode = #tpu.pipeline_mode<synchronous>, transform_indices = @transform_3, window_bounds = array<i64: 1, 128>}, {pipeline_mode = #tpu.pipeline_mode<synchronous>, transform_indices = @transform_4, window_bounds = array<i64: 1, 128>}, {pipeline_mode = #tpu.pipeline_mode<synchronous>, transform_indices = @transform_5, window_bounds = array<i64: 128, 256>}, {pipeline_mode = #tpu.pipeline_mode<synchronous>, transform_indices = @transform_6, window_bounds = array<i64: 1, 256>}, {pipeline_mode = #tpu.pipeline_mode<synchronous>, transform_indices = @transform_7, window_bounds = array<i64: 896, 128>}, {pipeline_mode = #tpu.pipeline_mode<synchronous>, transform_indices = @transform_8, window_bounds = array<i64: 1, 128>}, {pipeline_mode = #tpu.pipeline_mode<synchronous>, transform_indices = @transform_9, window_bounds = array<i64: 1, 128>}, {pipeline_mode = #tpu.pipeline_mode<synchronous>, transform_indices = @transform_10, window_bounds = array<i64: 1, 128>}, {pipeline_mode = #tpu.pipeline_mode<synchronous>, transform_indices = @transform_11, window_bounds = array<i64: 128, 128>}, {pipeline_mode = #tpu.pipeline_mode<synchronous>, transform_indices = @transform_12, window_bounds = array<i64: 1, 128>}, {transform_indices = @transform_13, window_bounds = array<i64: 1, 32, 128>}]} {
    %c0 = arith.constant 0 : index
    %c0_0 = arith.constant 0 : index
    %c0_1 = arith.constant 0 : index
    %0 = vector.load %arg3[%c0, %c0_0, %c0_1] : memref<1x32x128xf32, #tpu.memory_space<vmem>>, vector<1x32x128xf32>
    %1 = vector.shape_cast %0 : vector<1x32x128xf32> to vector<32x128xf32>
    %c0_2 = arith.constant 0 : index
    %c0_3 = arith.constant 0 : index
    %c0_4 = arith.constant 0 : index
    %2 = vector.load %arg2[%c0_2, %c0_3, %c0_4] : memref<1x8x128xf32, #tpu.memory_space<vmem>>, vector<1x8x128xf32>
    %3 = vector.shape_cast %2 : vector<1x8x128xf32> to vector<8x128xf32>
    %c0_5 = arith.constant 0 : index
    %c0_6 = arith.constant 0 : index
    %c0_7 = arith.constant 0 : index
    %4 = vector.load %arg4[%c0_5, %c0_6, %c0_7] : memref<1x8x128xf32, #tpu.memory_space<vmem>>, vector<1x8x128xf32>
    %5 = vector.shape_cast %4 : vector<1x8x128xf32> to vector<8x128xf32>
    %6 = vector.extract_strided_slice %3 {offsets = [5, 0], sizes = [3, 128], strides = [1, 1]} : vector<8x128xf32> to vector<3x128xf32>
    %7 = vector.extract_strided_slice %5 {offsets = [0, 0], sizes = [3, 128], strides = [1, 1]} : vector<8x128xf32> to vector<3x128xf32>
    %8 = tpu.concatenate %6, %1, %7 in 0 : vector<3x128xf32>, vector<32x128xf32>, vector<3x128xf32> -> vector<38x128xf32>
    %cst = arith.constant dense<0.000000e+00> : vector<38xf32>
    %9 = vector.multi_reduction <add>, %8, %cst [1] : vector<38x128xf32> to vector<38xf32>
    %10 = vector.shape_cast %9 : vector<38xf32> to vector<38x1xf32>
    %cst_8 = arith.constant 1.280000e+02 : f32
    %11 = vector.broadcast %cst_8 : f32 to vector<38x1xf32>
    %12 = arith.divf %10, %11 : vector<38x1xf32>
    %13 = arith.mulf %8, %8 : vector<38x128xf32>
    %cst_9 = arith.constant dense<0.000000e+00> : vector<38xf32>
    %14 = vector.multi_reduction <add>, %13, %cst_9 [1] : vector<38x128xf32> to vector<38xf32>
    %15 = vector.shape_cast %14 : vector<38xf32> to vector<38x1xf32>
    %cst_10 = arith.constant 1.280000e+02 : f32
    %16 = vector.broadcast %cst_10 : f32 to vector<38x1xf32>
    %17 = arith.divf %15, %16 : vector<38x1xf32>
    %18 = arith.mulf %12, %12 : vector<38x1xf32>
    %19 = arith.subf %17, %18 : vector<38x1xf32>
    %20 = vector.broadcast %12 : vector<38x1xf32> to vector<38x128xf32>
    %21 = arith.subf %8, %20 : vector<38x128xf32>
    %cst_11 = arith.constant 9.99999974E-6 : f32
    %22 = vector.broadcast %cst_11 : f32 to vector<38x1xf32>
    %23 = arith.addf %19, %22 : vector<38x1xf32>
    %24 = math.rsqrt %23 : vector<38x1xf32>
    %25 = vector.broadcast %24 : vector<38x1xf32> to vector<38x128xf32>
    %26 = arith.mulf %21, %25 : vector<38x128xf32>
    %c0_12 = arith.constant 0 : index
    %c0_13 = arith.constant 0 : index
    %27 = vector.load %arg5[%c0_12, %c0_13] : memref<1x128xf32, #tpu.memory_space<vmem>>, vector<1x128xf32>
    %28 = vector.broadcast %27 : vector<1x128xf32> to vector<38x128xf32>
    %29 = arith.mulf %26, %28 : vector<38x128xf32>
    %c0_14 = arith.constant 0 : index
    %c0_15 = arith.constant 0 : index
    %30 = vector.load %arg6[%c0_14, %c0_15] : memref<1x128xf32, #tpu.memory_space<vmem>>, vector<1x128xf32>
    %31 = vector.broadcast %30 : vector<1x128xf32> to vector<38x128xf32>
    %32 = arith.addf %29, %31 : vector<38x128xf32>
    %33 = arith.truncf %32 : vector<38x128xf32> to vector<38x128xbf16>
    %c0_16 = arith.constant 0 : index
    %c0_17 = arith.constant 0 : index
    %34 = vector.load %arg7[%c0_16, %c0_17] : memref<128x256xbf16, #tpu.memory_space<vmem>>, vector<128x256xbf16>
    %cst_18 = arith.constant dense<0.000000e+00> : vector<38x256xf32>
    %35 = tpu.matmul %33, %34, %cst_18 {dimension_numbers = #tpu.dot_dimension_numbers<[1], [0], [0], [1], [0, 0, 1, 1], [], []>} : vector<38x128xbf16>, vector<128x256xbf16>, vector<38x256xf32> -> vector<38x256xf32>
    %c0_19 = arith.constant 0 : index
    %c0_20 = arith.constant 0 : index
    %36 = vector.load %arg8[%c0_19, %c0_20] : memref<1x256xf32, #tpu.memory_space<vmem>>, vector<1x256xf32>
    %37 = vector.broadcast %36 : vector<1x256xf32> to vector<38x256xf32>
    %38 = arith.addf %35, %37 : vector<38x256xf32>
    %39 = vector.extract_strided_slice %38 {offsets = [0, 0], sizes = [38, 128], strides = [1, 1]} : vector<38x256xf32> to vector<38x128xf32>
    %40 = vector.extract_strided_slice %38 {offsets = [0, 128], sizes = [38, 128], strides = [1, 1]} : vector<38x256xf32> to vector<38x128xf32>
    %41 = arith.negf %40 : vector<38x128xf32>
    %42 = math.exp %41 : vector<38x128xf32>
    %cst_21 = arith.constant 1.000000e+00 : f32
    %43 = vector.broadcast %cst_21 : f32 to vector<38x128xf32>
    %44 = arith.addf %43, %42 : vector<38x128xf32>
    %45 = arith.divf %43, %44 : vector<38x128xf32>
    %46 = arith.mulf %39, %45 : vector<38x128xf32>
    %c32_i32 = arith.constant 32 : i32
    %47 = arith.muli %arg1, %c32_i32 : i32
    %c3_i32 = arith.constant 3 : i32
    %48 = arith.subi %47, %c3_i32 : i32
    %49 = tpu.iota {dimensions = array<i32: 0>} : vector<38x1xi32>
    %50 = vector.broadcast %48 : i32 to vector<38x1xi32>
    %51 = arith.addi %50, %49 : vector<38x1xi32>
    %c0_i32 = arith.constant 0 : i32
    %52 = vector.broadcast %c0_i32 : i32 to vector<38x1xi32>
    %53 = arith.cmpi sge, %51, %52 : vector<38x1xi32>
    %c72_i32 = arith.constant 72 : i32
    %54 = vector.broadcast %c72_i32 : i32 to vector<38x1xi32>
    %55 = arith.cmpi slt, %51, %54 : vector<38x1xi32>
    %56 = arith.andi %53, %55 : vector<38x1xi1>
    %cst_22 = arith.constant 0.000000e+00 : f32
    %57 = vector.shape_cast %56 : vector<38x1xi1> to vector<38x1xi1>
    %58 = vector.broadcast %57 : vector<38x1xi1> to vector<38x128xi1>
    %59 = vector.broadcast %cst_22 : f32 to vector<38x128xf32>
    %60 = arith.select %58, %46, %59 : vector<38x128xi1>, vector<38x128xf32>
    %61 = vector.extract_strided_slice %60 {offsets = [0, 0], sizes = [32, 128], strides = [1, 1]} : vector<38x128xf32> to vector<32x128xf32>
    %62 = vector.extract_strided_slice %60 {offsets = [1, 0], sizes = [32, 128], strides = [1, 1]} : vector<38x128xf32> to vector<32x128xf32>
    %63 = vector.extract_strided_slice %60 {offsets = [2, 0], sizes = [32, 128], strides = [1, 1]} : vector<38x128xf32> to vector<32x128xf32>
    %64 = vector.extract_strided_slice %60 {offsets = [3, 0], sizes = [32, 128], strides = [1, 1]} : vector<38x128xf32> to vector<32x128xf32>
    %65 = vector.extract_strided_slice %60 {offsets = [4, 0], sizes = [32, 128], strides = [1, 1]} : vector<38x128xf32> to vector<32x128xf32>
    %66 = vector.extract_strided_slice %60 {offsets = [5, 0], sizes = [32, 128], strides = [1, 1]} : vector<38x128xf32> to vector<32x128xf32>
    %67 = vector.extract_strided_slice %60 {offsets = [6, 0], sizes = [32, 128], strides = [1, 1]} : vector<38x128xf32> to vector<32x128xf32>
    %68 = tpu.concatenate %61, %62, %63, %64, %65, %66, %67 in 1 : vector<32x128xf32>, vector<32x128xf32>, vector<32x128xf32>, vector<32x128xf32>, vector<32x128xf32>, vector<32x128xf32>, vector<32x128xf32> -> vector<32x896xf32>
    %69 = arith.truncf %68 : vector<32x896xf32> to vector<32x896xbf16>
    %c0_23 = arith.constant 0 : index
    %c0_24 = arith.constant 0 : index
    %70 = vector.load %arg9[%c0_23, %c0_24] : memref<896x128xbf16, #tpu.memory_space<vmem>>, vector<896x128xbf16>
    %cst_25 = arith.constant dense<0.000000e+00> : vector<32x128xf32>
    %71 = tpu.matmul %69, %70, %cst_25 {dimension_numbers = #tpu.dot_dimension_numbers<[1], [0], [0], [1], [0, 0, 1, 1], [], []>} : vector<32x896xbf16>, vector<896x128xbf16>, vector<32x128xf32> -> vector<32x128xf32>
    %c0_26 = arith.constant 0 : index
    %c0_27 = arith.constant 0 : index
    %72 = vector.load %arg10[%c0_26, %c0_27] : memref<1x128xf32, #tpu.memory_space<vmem>>, vector<1x128xf32>
    %73 = vector.broadcast %72 : vector<1x128xf32> to vector<32x128xf32>
    %74 = arith.addf %71, %73 : vector<32x128xf32>
    %c0_28 = arith.constant 0 : index
    %c0_29 = arith.constant 0 : index
    %75 = vector.load %arg11[%c0_28, %c0_29] : memref<1x128xf32, #tpu.memory_space<vmem>>, vector<1x128xf32>
    %76 = vector.broadcast %75 : vector<1x128xf32> to vector<32x128xf32>
    %77 = arith.mulf %74, %76 : vector<32x128xf32>
    %c0_30 = arith.constant 0 : index
    %c0_31 = arith.constant 0 : index
    %78 = vector.load %arg12[%c0_30, %c0_31] : memref<1x128xf32, #tpu.memory_space<vmem>>, vector<1x128xf32>
    %79 = vector.broadcast %78 : vector<1x128xf32> to vector<32x128xf32>
    %80 = arith.addf %77, %79 : vector<32x128xf32>
    %81 = arith.negf %80 : vector<32x128xf32>
    %82 = math.exp %81 : vector<32x128xf32>
    %cst_32 = arith.constant 1.000000e+00 : f32
    %83 = vector.broadcast %cst_32 : f32 to vector<32x128xf32>
    %84 = arith.addf %83, %82 : vector<32x128xf32>
    %85 = arith.divf %83, %84 : vector<32x128xf32>
    %86 = arith.mulf %80, %85 : vector<32x128xf32>
    %87 = arith.truncf %86 : vector<32x128xf32> to vector<32x128xbf16>
    %c0_33 = arith.constant 0 : index
    %c0_34 = arith.constant 0 : index
    %88 = vector.load %arg13[%c0_33, %c0_34] : memref<128x128xbf16, #tpu.memory_space<vmem>>, vector<128x128xbf16>
    %cst_35 = arith.constant dense<0.000000e+00> : vector<32x128xf32>
    %89 = tpu.matmul %87, %88, %cst_35 {dimension_numbers = #tpu.dot_dimension_numbers<[1], [0], [0], [1], [0, 0, 1, 1], [], []>} : vector<32x128xbf16>, vector<128x128xbf16>, vector<32x128xf32> -> vector<32x128xf32>
    %c0_36 = arith.constant 0 : index
    %c0_37 = arith.constant 0 : index
    %90 = vector.load %arg14[%c0_36, %c0_37] : memref<1x128xf32, #tpu.memory_space<vmem>>, vector<1x128xf32>
    %91 = vector.broadcast %90 : vector<1x128xf32> to vector<32x128xf32>
    %92 = arith.addf %89, %91 : vector<32x128xf32>
    %93 = arith.addf %92, %1 : vector<32x128xf32>
    %c0_38 = arith.constant 0 : index
    %c0_39 = arith.constant 0 : index
    %c0_40 = arith.constant 0 : index
    %94 = vector.load %arg15[%c0_38, %c0_39, %c0_40] : memref<1x32x128xf32, #tpu.memory_space<vmem>>, vector<1x32x128xf32>
    %95 = vector.shape_cast %94 : vector<1x32x128xf32> to vector<32x128xf32>
    %96 = vector.shape_cast %93 : vector<32x128xf32> to vector<1x32x128xf32>
    tpu.vector_store %arg15[%c0_38, %c0_39, %c0_40], %96 {strides = array<i32>} : memref<1x32x128xf32, #tpu.memory_space<vmem>>, vector<1x32x128xf32>,
    return
  }
  func.func @transform_0(%arg0: i32, %arg1: i32) -> (i32, i32, i32) {
    %c4_i32 = arith.constant 4 : i32
    %0 = arith.muli %arg1, %c4_i32 : i32
    %c1_i32 = arith.constant 1 : i32
    %1 = arith.subi %0, %c1_i32 : i32
    %c0_i32 = arith.constant 0 : i32
    %2 = arith.maxsi %1, %c0_i32 : i32
    %c0_i32_0 = arith.constant 0 : i32
    %c0_i32_1 = arith.constant 0 : i32
    return %arg0, %2, %c0_i32_0 : i32, i32, i32
  }
  func.func @transform_1(%arg0: i32, %arg1: i32) -> (i32, i32, i32) {
    %c0_i32 = arith.constant 0 : i32
    %c0_i32_0 = arith.constant 0 : i32
    return %arg0, %arg1, %c0_i32 : i32, i32, i32
  }
  func.func @transform_2(%arg0: i32, %arg1: i32) -> (i32, i32, i32) {
    %c1_i32 = arith.constant 1 : i32
    %0 = arith.addi %arg1, %c1_i32 : i32
    %c4_i32 = arith.constant 4 : i32
    %1 = arith.muli %0, %c4_i32 : i32
    %c11_i32 = arith.constant 11 : i32
    %2 = arith.minsi %1, %c11_i32 : i32
    %c0_i32 = arith.constant 0 : i32
    %c0_i32_0 = arith.constant 0 : i32
    return %arg0, %2, %c0_i32 : i32, i32, i32
  }
  func.func @transform_3(%arg0: i32, %arg1: i32) -> (i32, i32) {
    %c0_i32 = arith.constant 0 : i32
    %c0_i32_0 = arith.constant 0 : i32
    %c0_i32_1 = arith.constant 0 : i32
    return %c0_i32, %c0_i32_0 : i32, i32
  }
  func.func @transform_4(%arg0: i32, %arg1: i32) -> (i32, i32) {
    %c0_i32 = arith.constant 0 : i32
    %c0_i32_0 = arith.constant 0 : i32
    %c0_i32_1 = arith.constant 0 : i32
    return %c0_i32, %c0_i32_0 : i32, i32
  }
  func.func @transform_5(%arg0: i32, %arg1: i32) -> (i32, i32) {
    %c0_i32 = arith.constant 0 : i32
    %c0_i32_0 = arith.constant 0 : i32
    %c0_i32_1 = arith.constant 0 : i32
    return %c0_i32, %c0_i32_0 : i32, i32
  }
  func.func @transform_6(%arg0: i32, %arg1: i32) -> (i32, i32) {
    %c0_i32 = arith.constant 0 : i32
    %c0_i32_0 = arith.constant 0 : i32
    %c0_i32_1 = arith.constant 0 : i32
    return %c0_i32, %c0_i32_0 : i32, i32
  }
  func.func @transform_7(%arg0: i32, %arg1: i32) -> (i32, i32) {
    %c0_i32 = arith.constant 0 : i32
    %c0_i32_0 = arith.constant 0 : i32
    %c0_i32_1 = arith.constant 0 : i32
    return %c0_i32, %c0_i32_0 : i32, i32
  }
  func.func @transform_8(%arg0: i32, %arg1: i32) -> (i32, i32) {
    %c0_i32 = arith.constant 0 : i32
    %c0_i32_0 = arith.constant 0 : i32
    %c0_i32_1 = arith.constant 0 : i32
    return %c0_i32, %c0_i32_0 : i32, i32
  }
  func.func @transform_9(%arg0: i32, %arg1: i32) -> (i32, i32) {
    %c0_i32 = arith.constant 0 : i32
    %c0_i32_0 = arith.constant 0 : i32
    %c0_i32_1 = arith.constant 0 : i32
    return %c0_i32, %c0_i32_0 : i32, i32
  }
  func.func @transform_10(%arg0: i32, %arg1: i32) -> (i32, i32) {
    %c0_i32 = arith.constant 0 : i32
    %c0_i32_0 = arith.constant 0 : i32
    %c0_i32_1 = arith.constant 0 : i32
    return %c0_i32, %c0_i32_0 : i32, i32
  }
  func.func @transform_11(%arg0: i32, %arg1: i32) -> (i32, i32) {
    %c0_i32 = arith.constant 0 : i32
    %c0_i32_0 = arith.constant 0 : i32
    %c0_i32_1 = arith.constant 0 : i32
    return %c0_i32, %c0_i32_0 : i32, i32
  }
  func.func @transform_12(%arg0: i32, %arg1: i32) -> (i32, i32) {
    %c0_i32 = arith.constant 0 : i32
    %c0_i32_0 = arith.constant 0 : i32
    %c0_i32_1 = arith.constant 0 : i32
    return %c0_i32, %c0_i32_0 : i32, i32
  }
  func.func @transform_13(%arg0: i32, %arg1: i32) -> (i32, i32, i32) {
    %c0_i32 = arith.constant 0 : i32
    %c0_i32_0 = arith.constant 0 : i32
    return %arg0, %arg1, %c0_i32 : i32, i32, i32
  }
}

</mosaic_0001>

<bundles_post_ra>
// kernel: tpu_custom_call.1
= control target key start
LH: loop header
LB: loop body
LE: loop exit
PB: predicated region body
PF: predicated region fallthrough
CT: control target
= control target key end

     0   :  { %s4053_s0 = inlined_call_operand.hbm [shape: f32[2,96,128], index: 0, kind: input, shape index: {}]   ;;  %s4054_s1 = inlined_call_operand.hbm [shape: f32[2,96,128], index: 1, kind: input, shape index: {}]   ;;  %s4055_s2 = inlined_call_operand.hbm [shape: f32[2,96,128], index: 2, kind: input, shape index: {}]   ;;  %s4056_s3 = inlined_call_operand.vmem [shape: f32[1,128], index: 3, kind: input, shape index: {}]   ;;  %s4057_s4 = inlined_call_operand.hbm [shape: f32[1,128], index: 4, kind: input, shape index: {}]   ;;  %s4058_s5 = inlined_call_operand.hbm [shape: bf16[128,256], index: 5, kind: input, shape index: {}]   ;;  %s4059_s6 = inlined_call_operand.vmem [shape: f32[1,256], index: 6, kind: input, shape index: {}]   ;;  %s4060_s7 = inlined_call_operand.hbm [shape: bf16[896,128], index: 7, kind: input, shape index: {}]   ;;  %s4061_s8 = inlined_call_operand.vmem [shape: f32[1,128], index: 8, kind: input, shape index: {}]   ;;  %s4062_s9 = inlined_call_operand.vmem [shape: f32[1,128], index: 9, kind: input, shape index: {}]   ;;  %s4063_s10 = inlined_call_operand.vmem [shape: f32[1,128], index: 10, kind: input, shape index: {}]   ;;  %s4064_s11 = inlined_call_operand.hbm [shape: bf16[128,128], index: 11, kind: input, shape index: {}]   ;;  %s4065_s12 = inlined_call_operand.vmem [shape: f32[1,128], index: 12, kind: input, shape index: {}]   ;;  %s4066_s13 = inlined_call_operand.hbm [shape: f32[2,96,128], index: 13, kind: output, shape index: {}]  }
   0x1   :  { %4085 = sst [smem:[#allocation33_spill]] %s4053_s0 }
   0x2   :  { %4086 = sst [smem:[#allocation34_spill]] %s4054_s1 }
   0x3   :  { %4087 = sst [smem:[#allocation35_spill]] %s4055_s2 }
   0x4   :  { %4088 = sst [smem:[#allocation36_spill]] %s4056_s3 }
   0x5   :  { %4089 = sst [smem:[#allocation37_spill]] %s4057_s4 }
   0x6   :  { %4090 = sst [smem:[#allocation38_spill]] %s4058_s5 }
   0x7   :  { %4091 = sst [smem:[#allocation39_spill]] %s4059_s6 }
   0x8   :  { %4092 = sst [smem:[#allocation40_spill]] %s4060_s7 }
   0x9   :  { %4093 = sst [smem:[#allocation41_spill]] %s4061_s8 }
   0xa   :  { %4094 = sst [smem:[#allocation42_spill]] %s4062_s9 }
   0xb   :  { %4095 = sst [smem:[#allocation43_spill]] %s4063_s10 }
   0xc   :  { %4096 = sst [smem:[#allocation44_spill]] %s4064_s11 }
   0xd   :  { %4097 = sst [smem:[#allocation45_spill]] %s4065_s12 }
   0xe   :  { %4098 = sst [smem:[#allocation46_spill]] %s4066_s13 }
   0xf   :  { %18 = vsyncpa [#allocation3], 0 }
  0x10   :  { %20 = vsyncpa [#allocation3 + $0x1], 0 }
  0x11   :  { %21 = vsyncpa [#allocation6], 0 }
  0x12   :  { %23 = vsyncpa [#allocation6 + $0x1], 0 }
  0x13   :  { %24 = vsyncpa [#allocation9], 0 }
  0x14   :  { %25 = vsyncpa [#allocation12], 0 }
  0x15   :  { %26 = vsyncpa [#allocation4], 0 }
  0x16   :  { %28 = vsyncpa [#allocation4 + $0x1], 0  ;;  %s3358_s25 = smov 0   ;;  %s3360_s26 = smov 0  }
  0x17   :  { %s3362_s27 = smov 0   ;;  %s3364_s28 = smov 0  }
  0x18   :  { %s3366_s29 = smov 0   ;;  %s3368_s30 = smov 0  }
  0x19   :  { %s3370_s14 = smov 0   ;;  %s3372_s15 = smov 0  }
  0x1a   :  { %s3374_s16 = smov 0   ;;  %s3376_s17 = smov 0  }
  0x1b   :  { %s3378_s18 = smov 0   ;;  %s3380_s19 = smov 0  }
  0x1c   :  { %s3382_s20 = smov 0   ;;  %s3384_s21 = smov 0  }
  0x1d LB: > { %4099 = sst [smem:[#allocation21_spill]] %s3235_s28  ;;  %s3429_s22 = sadd.s32 4294967295, %s3275_s21   ;;  %s3275_s21 = sphi %s3384_s21, %s34_s21   ;;  %s3271_s20 = sphi %s3382_s20, %s4163_s20   ;;  %s3267_s19 = sphi %s3380_s19, %s4162_s19   ;;  %s3263_s18 = sphi %s3378_s18, %s4161_s18   ;;  %s3259_s17 = sphi %s3376_s17, %s4160_s17   ;;  %s3255_s16 = sphi %s3374_s16, %s4171_s16   ;;  %s3251_s15 = sphi %s3372_s15, %s4170_s15   ;;  %s3247_s14 = sphi %s3370_s14, %s4169_s14   ;;  %s3243_s30 = sphi %s3368_s30, %s4168_s30   ;;  %s3239_s29 = sphi %s3366_s29, %s4167_s29   ;;  %s3235_s28 = sphi %s3364_s28, %s4158_s28   ;;  %s3231_s27 = sphi %s3362_s27, %s4166_s27   ;;  %s3227_s26 = sphi %s3360_s26, %s4165_s26   ;;  %s3223_s25 = sphi %s3358_s25, %s4164_s25  }
  0x1e   : > { %4100 = sst [smem:[#allocation22_spill]] %s3239_s29  ;;  %p2204_p0 = scmp.ge.s32.totalorder %s3275_s21, 1 }
  0x1f   : > { %4101 = sst [smem:[#allocation23_spill]] %s3259_s17  ;;  %p77_p1 = scmp.eq.s32.totalorder %s3429_s22, 0 }
  0x20   : > { %4102 = sst [smem:[#allocation24_spill]] %s3263_s18  ;;  %p389_p2 = scmp.lt.s32.totalorder %s3275_s21, 7 }
  0x21   : > { %4103 = sst [smem:[#allocation25_spill]] %s3267_s19  ;;  %s3277_s18 = smov [#allocation8]  }
  0x22   : > { %4104 = sst [smem:[#allocation26_spill]] %s3271_s20  ;;  %p3437_p3 = pnand %p2204_p0, %p389_p2 }
  0x23   : > { %s4105_s4 = sld [smem:[#allocation37_spill]]  ;;  %s406_s10 = sshll.u32 %s3277_s18, 4  ;;  %s407_s10 = int_to_ptr.vmem [resolvable:$true] %s406_s10 }
  0x24   : > { %s4106_s12 = scalar_select %p3437_p3, 1, 0 }
  0x25   : > { %p2685_p4 = pneg %p3437_p3  ;;  %s4108_s7 = sld [smem:[#allocation40_spill]] }
  0x26   : > { %4107 = sst [smem:[#allocation27_spill]] %s4106_s12  ;;  %s3278_s18 = smov [#allocation11]  }
  0x27   : > { %p3448_p5 = pnand %p2685_p4, %p77_p1  ;;  %s434_s8 = sshll.u32 %s3278_s18, 4  ;;  %s435_s8 = int_to_ptr.vmem [resolvable:$true] %s434_s8 }
  0x28   : > { %s4069_s9 = smov 64   ;;  %s4070_s23 = smov 4  }
  0x29   : > { %s404_s13 = sshll.u32 %s4105_s4, 4  ;;  %s3461_s17 = sshll.u32 %s3267_s19, 2  ;;  %s405_s13 = int_to_ptr.hbm [resolvable:$true] %s404_s13 }
  0x2a   : > { %2688 = dma.hbm_to_vmem [thread:$0]  (!%p3448_p5), %s405_s13, 16, %s407_s10, [#allocation9]  }
  0x2b   : > { %s432_s24 = sshll.u32 %s4108_s7, 4  ;;  %s2197_s7 = sadd.s32 4294967294, %s3275_s21   ;;  %s433_s24 = int_to_ptr.hbm [resolvable:$true] %s432_s24 }
  0x2c   : > { %2694 = dma.hbm_to_vmem [thread:$0]  (!%p3448_p5), %s433_s24, 7168, %s435_s8, [#allocation12], %s4069_s9, %s4069_s9, %s4070_s23  }
  0x2d   : > { %p71_p6 = scmp.eq.s32.totalorder %s3275_s21, 0  ;;  %p98_p7 = scmp.ne.s32.totalorder %s3243_s30, %s3239_s29 }
  0x2e   : > { %p104_p8 = scmp.ne.s32.totalorder %s3239_s29, %s3235_s28  ;;  %p376_p9 = scmp.eq.s32.totalorder %s3429_s22, 5 }
  0x2f   : > { %p382_p10 = scmp.eq.s32.totalorder %s2197_s7, 5  ;;  %p3472_p11 = por %p98_p7, %p71_p6 }
  0x30   : > { %p3478_p12 = por %p104_p8, %p77_p1  ;;  %p3482_p13 = por %p376_p9, %p98_p7 }
  0x31   : > { %p3486_p0 = por %p382_p10, %p104_p8  ;;  %p4082_p2 = scmp.lt.s32.totalorder %s3275_s21, 6 }
  0x32   : > { %s4111_s8 = scalar_select %p3478_p12, 1, 0 }
  0x33   : > { %s4113_s13 = scalar_select %p3482_p13, 1, 0 }
  0x34   : > { %4112 = sst [smem:[#allocation28_spill]] %s4111_s8  ;;  %s3492_s7 = smul.u32 12, %s3271_s20 }
  0x35   : > { %4114 = sst [smem:[#allocation29_spill]] %s4113_s13  ;;  %s499_s18 = sand.u32 1, %s3275_s21  }
  0x36   : > { %s4115_s24 = scalar_select %p3486_p0, 1, 0 }
  0x37   : > { %s501_s9 = sand.u32 1, %s3243_s30   ;;  %s508_s28 = sadd.s32 %s3492_s7, %s3461_s17 }
  0x38   : > { %4116 = sst [smem:[#allocation30_spill]] %s4115_s24  ;;  %s2214_s23 = sshll.u32 %s501_s9, 5 }
  0x39   : > { %s2216_s6 = sshll.u32 %s508_s28, 3  ;;  %s503_s3 = scalar_lea.vmem [#allocation5], %s2214_s23 }
  0x3a   : > { %s513_s29 = sshll.u32 %s503_s3, 4  ;;  %s4117_s1 = sld [smem:[#allocation34_spill]]  ;;  %s514_s29 = int_to_ptr.vmem [resolvable:$true] %s513_s29 }
  0x3b   : > { %p2702_p4 = pnand %p4082_p2, %p3472_p11  ;;  %s4118_s5 = sld [smem:[#allocation38_spill]] }
  0x3c   : > { %s3508_s3 = scalar_lea.sflag [#allocation6], %s499_s18  ;;  %s3281_s12 = smov 128  }
  0x3d   : > { %s4119_s11 = sld [smem:[#allocation44_spill]]  ;;  %s3283_s10 = smov [#allocation10]  }
  0x3e   : > { %s417_s0 = sshll.u32 %s3283_s10, 4  ;;  %s3284_s8 = smov [#allocation13]   ;;  %s418_s0 = int_to_ptr.vmem [resolvable:$true] %s417_s0 }
  0x3f   : > { %s457_s18 = sshll.u32 %s3284_s8, 4  ;;  %s4120_s24 = smov 4   ;;  %s458_s18 = int_to_ptr.vmem [resolvable:$true] %s457_s18 }
  0x40   : > { %s510_s2 = scalar_lea.hbm %s4117_s1, %s2216_s6  ;;  %s3282_s6 = smov 8  }
  0x41   : > { %s511_s13 = sshll.u32 %s510_s2, 4  ;;  %s415_s9 = sshll.u32 %s4118_s5, 4  ;;  %s512_s13 = int_to_ptr.hbm [resolvable:$true] %s511_s13  ;;  %s416_s9 = int_to_ptr.hbm [resolvable:$true] %s415_s9 }
  0x42   : > { %2704 = dma.hbm_to_vmem [thread:$0]  (!%p2702_p4), %s512_s13, 512, %s514_s29, %s3508_s3, %s3281_s12, %s3281_s12, %s3282_s6  }
  0x43   : > { %s455_s23 = sshll.u32 %s4119_s11, 4  ;;  %s4121_s29 = smov 64   ;;  %s456_s23 = int_to_ptr.hbm [resolvable:$true] %s455_s23 }
  0x44   : > { %2691 = dma.hbm_to_vmem [thread:$0]  (!%p3448_p5), %s416_s9, 2048, %s418_s0, [#allocation9], %s3281_s12, %s3281_s12, %s3282_s6  }
  0x45   : > { %2697 = dma.hbm_to_vmem [thread:$0]  (!%p3448_p5), %s456_s23, 1024, %s458_s18, [#allocation12], %s4121_s29, %s4121_s29, %s4120_s24  }
  0x46   : > { %s43_s13 = sadd.s32 1, %s3267_s19  ;;  %s46_s2 = sadd.s32 1, %s3271_s20 }
  0x47   : > { %p44_p7 = scmp.ge.s32.totalorder %s43_s13, 3  ;;  %s2199_s28 = sadd.s32 4294967295, %s3461_s17 }
  0x48   : > { %p52_p8 = scmp.gt.s32.totalorder %s2199_s28, 0  ;;  %s63_s9 = sadd.s32 1, %s3255_s16 }
  0x49   : > { %s4173_s13 = smov (%p44_p7, %s43_s13), 0  ;;  %s4175_s2 = smov (!%p44_p7, %s46_s2), %s3271_s20 }
  0x4a   : > { %4122 = sst [smem:[#allocation31_spill]] %s4173_s13  ;;  %s4177_s28 = smov (!%p52_p8, %s2199_s28), 0 }
  0x4b   : > { %p48_p9 = scmp.ge.s32.totalorder %s4175_s2, 2  ;;  %s2200_s4 = sshll.u32 %s4173_s13, 2 }
  0x4c   : > { %s2201_s12 = sadd.s32 4294967295, %s2200_s4  ;;  %p70_p5 = scmp.ne.s32.totalorder %s3255_s16, %s3251_s15 }
  0x4d   : > { %s4179_s2 = smov (%p48_p9, %s4175_s2), 0  ;;  %p56_p10 = scmp.gt.s32.totalorder %s2201_s12, 0 }
  0x4e   : > { %4123 = sst [smem:[#allocation32_spill]] %s4179_s2  ;;  %p3535_p11 = por %p71_p6, %p70_p5 }
  0x4f   : > { %s3541_s23 = ssub.s32 %s3271_s20, %s4179_s2  ;;  %p76_p4 = scmp.ne.s32.totalorder %s3251_s15, %s3247_s14 }
  0x50   : > { %s4181_s12 = smov (!%p56_p10, %s2201_s12), 0  ;;  %s87_s0 = ssub.s32 %s3267_s19, %s4173_s13 }
  0x51   : > { %p3547_p7 = por %p77_p1, %p76_p4  ;;  %s59_s8 = ssub.s32 %s4177_s28, %s4181_s12 }
  0x52   : > { %s88_s18 = sor.u32 %s87_s0, %s3541_s23  ;;  %s60_s24 = sor.u32 %s59_s8, %s3541_s23 }
  0x53   : > { %p89_p8 = scmp.eq.s32.totalorder %s88_s18, 0  ;;  %p61_p9 = scmp.eq.s32.totalorder %s60_s24, 0 }
  0x54   : > { %s2574_s29 = sadd.s32 4, %s2200_s4  ;;  %s4126_s1 = sadd.s32 1, %s3243_s30 }
  0x55   : > { %s3558_s5 = scalar_select %p89_p8, %s3243_s30, %s4126_s1  }
  0x56   : > { %s3561_s14 = scalar_select %p61_p9, %s3255_s16, %s63_s9  }
  0x57   : > { %p120_p5 = scmp.lt.s32.totalorder %s2574_s29, 11  ;;  %s474_s11 = sand.u32 1, %s3255_s16  }
  0x58   : > { %s2210_s2 = sshll.u32 %s474_s11, 3  ;;  %s486_s12 = sadd.s32 %s3492_s7, %s4177_s28 }
  0x59   : > { %s2213_s0 = sshll.u32 %s486_s12, 3  ;;  %s478_s8 = scalar_lea.vmem [#allocation2], %s2210_s2 }
  0x5a   : > { %s492_s18 = sshll.u32 %s478_s8, 4  ;;  %s4127_s1 = sld [smem:[#allocation33_spill]]  ;;  %s493_s18 = int_to_ptr.vmem [resolvable:$true] %s492_s18 }
  0x5b   : > { %p2699_p10 = pnand %p4082_p2, %p3535_p11  ;;  %s475_s28 = scalar_lea.sflag [#allocation3], %s474_s11 }
  0x5c   : > { %s2572_s2 = sadd.s32 4, %s3461_s17  ;;  %s127_s12 = sadd.s32 1, %s3231_s27 }
  0x5d   : > { %p116_p4 = scmp.lt.s32.totalorder %s2572_s2, 11  ;;  %p134_p8 = scmp.ne.s32.totalorder %s3231_s27, %s3227_s26 }
  0x5e   : > { %s4183_s29 = smov (!%p120_p5, %s2574_s29), 11  ;;  %p140_p11 = scmp.ne.s32.totalorder %s3227_s26, %s3223_s25 }
  0x5f   : > { %s4185_s2 = smov (!%p116_p4, %s2572_s2), 11  ;;  %p3579_p9 = por %p134_p8, %p71_p6 }
  0x60   : > { %s488_s13 = scalar_lea.hbm %s4127_s1, %s2213_s0  ;;  %s525_s11 = sand.u32 1, %s3231_s27  }
  0x61   : > { %s490_s9 = sshll.u32 %s488_s13, 4  ;;  %s123_s13 = ssub.s32 %s4185_s2, %s4183_s29  ;;  %s491_s9 = int_to_ptr.hbm [resolvable:$true] %s490_s9 }
  0x62   : > { %2701 = dma.hbm_to_vmem [thread:$0]  (!%p2699_p10), %s491_s9, 128, %s493_s18, %s475_s28  }
  0x63   : > { %s124_s6 = sor.u32 %s123_s13, %s3541_s23  ;;  %p3589_p10 = por %p140_p11, %p77_p1 }
  0x64   : > { %p125_p2 = scmp.eq.s32.totalorder %s124_s6, 0  ;;  %s2217_s8 = sshll.u32 %s525_s11, 3 }
  0x65   : > { %s535_s18 = sadd.s32 %s3492_s7, %s4185_s2  ;;  %s527_s1 = scalar_lea.vmem [#allocation7], %s2217_s8 }
  0x66   : > { %s3595_s4 = scalar_select %p125_p2, %s3231_s27, %s127_s12  }
  0x67   : > { %s2219_s24 = sshll.u32 %s535_s18, 3  ;;  %s541_s9 = sshll.u32 %s527_s1, 4  ;;  %s542_s9 = int_to_ptr.vmem [resolvable:$true] %s541_s9 }
  0x68   : > { %s4130_s25 = sld [smem:[#allocation35_spill]]  ;;  %p4131_p6 = scmp.lt.s32.totalorder %s3275_s21, 6 }
  0x69   : > { %s552_s7 = sand.u32 (!%p3437_p3), 1, %s3251_s15  }
  0x6a   : > { %p2705_p5 = pnand %p4131_p6, %p3579_p9  ;;  %s2221_s2 = sshll.u32 (!%p3437_p3), %s552_s7, 3 }
  0x6b   : > { %s553_s12 = scalar_lea.sflag (!%p3437_p3), [#allocation3], %s552_s7  ;;  %s556_s13 = scalar_lea.vmem (!%p3437_p3), [#allocation2], %s2221_s2 }
  0x6c   : > { %550 = sbr.rel (%p3437_p3) target bundleno = 869 (0x365), region = 72 }
  0x6e   : > { %s537_s29 = scalar_lea.hbm %s4130_s25, %s2219_s24 }
  0x6f   : > { %s539_s19 = sshll.u32 %s537_s29, 4  ;;  %s540_s19 = int_to_ptr.hbm [resolvable:$true] %s539_s19 }
  0x70   : > { %2707 = dma.hbm_to_vmem [thread:$0]  (!%p2705_p5), %s540_s19, 128, %s542_s9, %s3508_s3  }
  0x71   : > { %3198 = dma.done.wait (%p3547_p7), %s553_s12, 128  }
  0x72   : > { %3200 = vsyncadd (%p3547_p7), %s553_s12, 4294967168  ;;  %s4133_s20 = sld [smem:[#allocation22_spill]]  ;;  %s562_s11 = sand.u32 1, %s3429_s22  }
  0x73   : > { %s563_s6 = scalar_lea.sflag [#allocation6], %s562_s11 }
  0x78   : > { %s564_s19 = sand.u32 1, %s4133_s20  }
  0x79   : > { %s3616_s3 = sshll.u32 %s564_s19, 5 }
  0x7a   : > { %s3619_s8 = scalar_lea.vmem [#allocation5], %s3616_s3 }
  0x7b   : > { %3202 = dma.done.wait (%p3478_p12), %s563_s6, 512  }
  0x7c   : > { %3204 = vsyncadd (%p3478_p12), %s563_s6, 4294966784  ;;  %s574_s10 = sand.u32 1, %s3227_s26  }
  0x7d   : > { %s2223_s18 = sshll.u32 %s574_s10, 3 }
  0x7e   : > { %s576_s24 = scalar_lea.vmem [#allocation7], %s2223_s18 }
  0x7f   : > { %3206 = dma.done.wait (%p3589_p10), %s563_s6, 128  }
  0x80   : > { %3208 = vsyncadd (%p3589_p10), %s563_s6, 4294967168 }
  0x81   : > { %3210 = dma.done.wait (%p77_p1), [#allocation9], 2064  }
  0x82   : > { %3212 = vsyncadd (%p77_p1), [#allocation9], 4294965232 }
  0x83   : > { %3214 = dma.done.wait (%p77_p1), [#allocation12], 8192  }
  0x84   : > { %3216 = vsyncadd (%p77_p1), [#allocation12], 4294959104  ;;  %v660_v0 = vld [vmem:[%s3619_s8] sm:$0xff]  ;;  %v664_v1 = vld [vmem:[%s556_s13] sm:$0xff]  ;;  %vm673_vm0 = vcmask 1042432   ;;  %vm699_vm1 = vcmask 1045504  }
  0x85   : > { %v661_v2 = vld [vmem:[%s3619_s8 + $0x8] sm:$0xff]  ;;  %v667_v3 = vrot.slane %v664_v1, 5  ;;  %v674_v4 = vrot.slane %v660_v0, 5  ;;  %v662_v5 = vld [vmem:[%s3619_s8 + $0x10] sm:$0xff]  ;;  %v663_v8 = vld [vmem:[%s3619_s8 + $0x18] sm:$0xff]  ;;  %v3285_v24 = vmov 128.0  }
  0x86   : > { %v675_v6 = vrot.slane %v661_v2, 5  ;;  %v677_v7 = vrot.slane %v662_v5, 5  ;;  %v679_v12 = vrot.slane %v663_v8, 5  ;;  %v665_v14 = vld [vmem:[%s576_s24] sm:$0xff]  ;;  %2851 = vrcp.f32 %v3285_v24  ;;  %v2279_v32 = vld [vmem:[#allocation10 + $0x60] sm:$0xf] }
  0x87   : > { %v3643_v9 = vsel %vm673_vm0, %v667_v3, %v674_v4  ;;  %v687_v17 = vrot.slane %v665_v14, 5  ;;  %v2287_v25 = vld [vmem:[#allocation10 + $0x70] sm:$0xf]  ;;  %v2592_v26 = vld [vmem:[#allocation10 + $0x74] sm:$0xf0]  ;;  %s4135_s1 = sld [smem:[#allocation36_spill]] }
  0x88   : > { %691 = vadd.xlane.f32.xlu0 %v3643_v9  ;;  %v715_v10 = vmul.f32 %v3643_v9, %v3643_v9  ;;  %v3649_v11 = vsel %vm673_vm0, %v675_v6, %v677_v7  ;;  %v3653_v13 = vsel %vm673_vm0, %v674_v4, %v675_v6  ;;  %v3658_v16 = vsel %vm673_vm0, %v677_v7, %v679_v12  ;;  %v2591_v27 = vld [vmem:[#allocation10 + $0x74] sm:$0xf]  ;;  %v2289_v29 = vld [vmem:[#allocation10 + $0x78] sm:$0xf0]  ;;  %v2590_v33 = vld [vmem:[#allocation10 + $0x64] sm:$0xf0] }
  0x89   : > { %695 = vadd.xlane.f32.xlu2 %v3649_v11  ;;  %v716_v15 = vmul.f32 %v3653_v13, %v3653_v13  ;;  %v3663_v18 = vsel %vm673_vm0, %v679_v12, %v687_v17  ;;  %v717_v19 = vmul.f32 %v3649_v11, %v3649_v11  ;;  %v718_v20 = vmul.f32 %v3658_v16, %v3658_v16  ;;  %v2589_v34 = vld [vmem:[#allocation10 + $0x64] sm:$0xf]  ;;  %v2281_v37 = vld [vmem:[#allocation10 + $0x68] sm:$0xf0]  ;;  %v2271_v39 = vld [vmem:[#allocation10 + $0x50] sm:$0xf] }
  0x8a   : > { %720 = vadd.xlane.f32.xlu1 %v715_v10  ;;  %v700_v21 = vsel %vm699_vm1, %v3663_v18, 0.0  ;;  %v719_v22 = vmul.f32 %v3663_v18, %v3663_v18  ;;  %v2288_v28 = vor.u32 %v2592_v26, %v2287_v25  ;;  %v2292_v31 = vor.u32 %v2591_v27, %v2289_v29  ;;  %v2588_v40 = vld [vmem:[#allocation10 + $0x54] sm:$0xf0]  ;;  %v2587_v41 = vld [vmem:[#allocation10 + $0x54] sm:$0xf]  ;;  %s4136_s25 = sld [smem:[#allocation39_spill]] }
  0x8b   : > { %v2280_v36 = vor.u32 %v2590_v33, %v2279_v32  ;;  %v2284_v38 = vor.u32 %v2589_v34, %v2281_v37  ;;  %v2272_v43 = vor.u32 %v2588_v40, %v2271_v39  ;;  %v2273_v44 = vld [vmem:[#allocation10 + $0x58] sm:$0xf0]  ;;  %v2263_v46 = vld [vmem:[#allocation10 + $0x40] sm:$0xf]  ;;  %v2586_v47 = vld [vmem:[#allocation10 + $0x44] sm:$0xf0] }
  0x8c   : > { %v728_v23 = vsel %vm699_vm1, %v719_v22, 0.0  ;;  %v2852_v30 = vpop.eup %2851  ;;  %934 = vmatpush.bf16.msra.mxu0 %v2288_v28  ;;  %957 = vmatpush.bf16.msra.mxu1 %v2292_v31  ;;  %v2276_v45 = vor.u32 %v2587_v41, %v2273_v44  ;;  %v2585_v48 = vld [vmem:[#allocation10 + $0x44] sm:$0xf]  ;;  %v2264_v50 = vor.u32 %v2586_v47, %v2263_v46  ;;  %v2265_v51 = vld [vmem:[#allocation10 + $0x48] sm:$0xf0]  ;;  %s4137_s29 = sld [smem:[#allocation23_spill]] }
  0x8d   : > { %v704_v35 = vmul.f32 128.0, %v2852_v30  ;;  %v2268_v52 = vor.u32 %v2585_v48, %v2265_v51  ;;  %v2255_v53 = vld [vmem:[#allocation10 + $0x30] sm:$0xf]  ;;  %v2584_v54 = vld [vmem:[#allocation10 + $0x34] sm:$0xf0]  ;;  %vm708_vm2 = vweird.f32 %v2852_v30  ;;  %s4148_s13 = sld [smem:[#allocation41_spill]] }
  0x8e   : > { %v2583_v55 = vld [vmem:[#allocation10 + $0x34] sm:$0xf]  ;;  %v2256_v57 = vor.u32 %v2584_v54, %v2255_v53  ;;  %v2257_v58 = vld [vmem:[#allocation10 + $0x38] sm:$0xf0]  ;;  %v2247_v60 = vld [vmem:[#allocation10 + $0x20] sm:$0xf] }
  0x8f   : > { %v705_v42 = vsub.f32 1.0, %v704_v35  ;;  %v2260_v59 = vor.u32 %v2583_v55, %v2257_v58  ;;  %v2582_v61 = vld [vmem:[#allocation10 + $0x24] sm:$0xf0]  ;;  %v2581_v62 = vld [vmem:[#allocation10 + $0x24] sm:$0xf]  ;;  %s4149_s6 = sld [smem:[#allocation42_spill]] }
  0x90   : > { %693 = vadd.xlane.f32.xlu0 %v3653_v13  ;;  %935 = vmatpush.bf16.msra.mxu0 %v2280_v36  ;;  %v2248_v0 = vor.u32 %v2582_v61, %v2247_v60  ;;  %v2249_v1 = vld [vmem:[#allocation10 + $0x28] sm:$0xf0]  ;;  %v2239_v6 = vld [vmem:[#allocation10 + $0x10] sm:$0xf]  ;;  %v2580_v7 = vld [vmem:[#allocation10 + $0x14] sm:$0xf0] }
  0x91   : > { %697 = vadd.xlane.f32.xlu2 %v3658_v16  ;;  %958 = vmatpush.bf16.msra.mxu1 %v2284_v38  ;;  %v706_v49 = vmul.f32 %v2852_v30, %v705_v42  ;;  %v2252_v2 = vor.u32 %v2581_v62, %v2249_v1  ;;  %v2579_v8 = vld [vmem:[#allocation10 + $0x14] sm:$0xf]  ;;  %v2240_v12 = vor.u32 %v2580_v7, %v2239_v6  ;;  %v2241_v14 = vld [vmem:[#allocation10 + $0x18] sm:$0xf0]  ;;  %v2578_v22 = vld [vmem:[#allocation10 + $0x4] sm:$0xf0] }
  0x92   : > { %722 = vadd.xlane.f32.xlu1 %v716_v15  ;;  %v2233_v25 = vld [vmem:[#allocation10 + $0x8] sm:$0xf0]  ;;  %s2298_s23 = sshll.u32 %s4137_s29, 5  ;;  %s4150_s24 = sld [smem:[#allocation43_spill]] }
  0x93   : > { %v707_v56 = vadd.f32 %v2852_v30, %v706_v49  ;;  %s2299_s7 = sadd.s32 4294967293, %s2298_s23  ;;  %s4151_s22 = sld [smem:[#allocation24_spill]] }
  0x94   : > { %936 = vmatpush.bf16.msra.mxu0 %v2272_v43  ;;  %s4152_s9 = sld [smem:[#allocation45_spill]]  ;;  %s649_s28 = scalar_lea.vmem [#allocation14], %s3616_s3 }
  0x95   : > { %959 = vmatpush.bf16.msra.mxu1 %v2276_v45  ;;  %v3674_v63 = vsel %vm708_vm2, %v2852_v30, %v707_v56  ;;  %s2567_s23 = sshll.u32 %s4137_s29, 2  ;;  %s4153_s3 = sld [smem:[#allocation46_spill]] }
  0x96   : > { %s2004_s29 = scalar_lea.sflag [#allocation4], %s564_s19 }
  0x98   : > { %724 = vadd.xlane.f32.xlu0 %v717_v19  ;;  %937 = vmatpush.bf16.msra.mxu0 %v2264_v50  ;;  %v2244_v19 = vor.u32 %v2579_v8, %v2241_v14 }
  0x99   : > { %701 = vadd.xlane.f32.xlu2 %v700_v21  ;;  %960 = vmatpush.bf16.msra.mxu1 %v2268_v52  ;;  %v2231_v21 = vld [vmem:[#allocation10] sm:$0xf] }
  0x9a   : > { %726 = vadd.xlane.f32.xlu1 %v718_v20  ;;  %v2232_v24 = vor.u32 %v2578_v22, %v2231_v21  ;;  %v2846_v22 = vld [vmem:[#allocation8] ss:$0 sm:$0xff] }
  0x9c   : > { %938 = vmatpush.bf16.msra.mxu0 %v2256_v57 }
  0x9d   : > { %961 = vmatpush.bf16.msra.mxu1 %v2260_v59 }
  0xa0   : > { %729 = vadd.xlane.f32.xlu0 %v728_v23  ;;  %939 = vmatpush.bf16.msra.mxu0 %v2248_v0  ;;  %v2577_v23 = vld [vmem:[#allocation10 + $0x4] sm:$0xf] }
  0xa1   : > { %962 = vmatpush.bf16.msra.mxu1 %v2252_v2  ;;  %v2236_v27 = vor.u32 %v2577_v23, %v2233_v25 }
  0xa4   : > { %940 = vmatpush.bf16.msra.mxu0 %v2240_v12 }
  0xa5   : > { %963 = vmatpush.bf16.msra.mxu1 %v2244_v19 }
  0xa8   : > { %941 = vmatpush.bf16.msra.mxu0 %v2232_v24 }
  0xa9   : > { %964 = vmatpush.bf16.msra.mxu1 %v2236_v27 }
  0xfb   : > { %v692_v3 = vpop.xlane.xlu0 %691 }
  0xfc   : > { %v3677_v4 = vmul.f32 %v3674_v63, %v692_v3  ;;  %v696_v5 = vpop.xlane.xlu2 %695 }
  0xfd   : > { %v721_v10 = vpop.xlane.xlu1 %720  ;;  %v3686_v32 = vmul.f32 %v3674_v63, %v696_v5 }
  0xfe   : > { %v736_v15 = vmul.f32 %v3677_v4, %v3677_v4  ;;  %v731_v17 = vmul.f32 %v721_v10, %v3674_v63  ;;  %v746_v3 = vsub.f32 %v3643_v9, %v3677_v4 }
  0xff   : > { %v738_v38 = vmul.f32 %v3686_v32, %v3686_v32 }
 0x100   : > { %v741_v20 = vsub.f32 %v731_v17, %v736_v15 }
 0x102   : > { %v751_v26 = vadd.f32 1e-05, %v741_v20 }
 0x103   : > { %v694_v28 = vpop.xlane.xlu0 %693 }
 0x104   : > { %2853 = vrsqrt.f32 %v751_v26  ;;  %v3683_v29 = vmul.f32 %v3674_v63, %v694_v28  ;;  %v698_v30 = vpop.xlane.xlu2 %697  ;;  %vm762_vm4 = vweird.f32 %v751_v26 }
 0x105   : > { %v723_v31 = vpop.xlane.xlu1 %722  ;;  %v3692_v36 = vmul.f32 %v3674_v63, %v698_v30 }
 0x106   : > { %v737_v33 = vmul.f32 %v3683_v29, %v3683_v29  ;;  %v732_v34 = vmul.f32 %v723_v31, %v3674_v63  ;;  %v747_v17 = vsub.f32 %v3653_v13, %v3683_v29 }
 0x107   : > { %v739_v42 = vmul.f32 %v3692_v36, %v3692_v36 }
 0x108   : > { %v742_v35 = vsub.f32 %v732_v34, %v737_v33 }
 0x10a   : > { %v2854_v37 = vpop.eup %2853  ;;  %v752_v39 = vadd.f32 1e-05, %v742_v35 }
 0x10b   : > { %v757_v40 = vmul.f32 %v2854_v37, %v751_v26  ;;  %v725_v41 = vpop.xlane.xlu0 %724  ;;  %vm763_vm3 = vweird.f32 %v2854_v37 }
 0x10c   : > { %2855 = vrsqrt.f32 %v752_v39  ;;  %v733_v43 = vmul.f32 %v725_v41, %v3674_v63  ;;  %v702_v44 = vpop.xlane.xlu2 %701  ;;  %vm764_vm5 = vmor %vm762_vm4, %vm763_vm3  ;;  %vm772_vm7 = vweird.f32 %v752_v39 }
 0x10d   : > { %v758_v45 = vmul.f32 %v2854_v37, %v757_v40  ;;  %v727_v46 = vpop.xlane.xlu1 %726  ;;  %v3701_v49 = vmul.f32 %v3674_v63, %v702_v44 }
 0x10e   : > { %v743_v47 = vsub.f32 %v733_v43, %v738_v38  ;;  %v734_v48 = vmul.f32 %v727_v46, %v3674_v63 }
 0x10f   : > { %v759_v50 = vmul.f32 0.5, %v758_v45  ;;  %v740_v56 = vmul.f32 %v3701_v49, %v3701_v49 }
 0x110   : > { %v753_v51 = vadd.f32 1e-05, %v743_v47  ;;  %v744_v52 = vsub.f32 %v734_v48, %v739_v42 }
 0x111   : > { %v760_v53 = vsub.f32 1.5, %v759_v50 }
 0x112   : > { %v2856_v54 = vpop.eup %2855  ;;  %2857 = vrsqrt.f32 %v753_v51  ;;  %v754_v55 = vadd.f32 1e-05, %v744_v52  ;;  %vm782_vm13 = vweird.f32 %v753_v51 }
 0x113   : > { %v761_v57 = vmul.f32 %v2854_v37, %v760_v53  ;;  %v767_v58 = vmul.f32 %v2856_v54, %v752_v39  ;;  %v730_v59 = vpop.xlane.xlu0 %729  ;;  %vm773_vm6 = vweird.f32 %v2856_v54  ;;  %v748_v39 = vsub.f32 %v3649_v11, %v3686_v32  ;;  %v2600_v53 = vld [vmem:[#allocation11 + $0x38] sm:$0xff] }
 0x114   : > { %2859 = vrsqrt.f32 %v754_v55  ;;  %v735_v60 = vmul.f32 %v730_v59, %v3674_v63  ;;  %v2845_v63 = vld [vmem:[%s4135_s1] ss:$0 sm:$0xff]  ;;  %vm774_vm8 = vmor %vm772_vm7, %vm773_vm6  ;;  %vm792_vm9 = vweird.f32 %v754_v55  ;;  %1677 = vmatpush.bf16.msra.mxu2 %v2600_v53  ;;  %s3133_s1 = scalar_lea.hbm %s4153_s3, 192 }
 0x115   : > { %v768_v61 = vmul.f32 %v2856_v54, %v767_v58  ;;  %v765_v1 = vsel %vm764_vm5, %v2854_v37, %v761_v57  ;;  %v749_v37 = vsub.f32 %v3658_v16, %v3692_v36  ;;  %v750_v16 = vsub.f32 %v3663_v18, %v3701_v49  ;;  %v2608_v57 = vld [vmem:[#allocation11 + $0x78] sm:$0xff] }
 0x116   : > { %v745_v62 = vsub.f32 %v735_v60, %v740_v56  ;;  %v806_v10 = vmul.f32 %v765_v1, %v746_v3  ;;  %v2597_v56 = vld [vmem:[#allocation11 + $0x20] sm:$0xff]  ;;  %v2632_v58 = vld [vmem:[#allocation11 + $0x138] sm:$0xff]  ;;  %1696 = vmatpush.bf16.msra.mxu3 %v2608_v57  ;;  %v2607_v60 = vld [vmem:[#allocation11 + $0x70] sm:$0xff] }
 0x117   : > { %v769_v0 = vmul.f32 0.5, %v768_v61  ;;  %v2640_v18 = vld [vmem:[#allocation11 + $0x178] sm:$0xff]  ;;  %1753 = vmatpush.bf16.msrb.mxu0 %v2632_v58  ;;  %v2631_v61 = vld [vmem:[#allocation11 + $0x130] sm:$0xff]  ;;  %v2630_v3 = vld [vmem:[#allocation11 + $0x128] sm:$0xff] }
 0x118   : > { %v2858_v2 = vpop.eup %2857  ;;  %v755_v5 = vadd.f32 1e-05, %v745_v62  ;;  %v815_v21 = vmul.f32 %v2845_v63, %v806_v10  ;;  %v3722_v49 = vld [vmem:[%s4136_s25] sm:$0x3]  ;;  %1772 = vmatpush.bf16.msrb.mxu1 %v2640_v18  ;;  %v2639_v62 = vld [vmem:[#allocation11 + $0x170] sm:$0xff]  ;;  %s2660_s25 = smul.u32 12, %s4151_s22 }
 0x119   : > { %v770_v6 = vsub.f32 1.5, %v769_v0  ;;  %v777_v7 = vmul.f32 %v2858_v2, %v753_v51  ;;  %vm783_vm11 = vweird.f32 %v2858_v2  ;;  %v2596_v59 = vld [vmem:[#allocation11 + $0x18] sm:$0xff]  ;;  %v3725_v0 = vperm.slane %v3722_v49, 1  ;;  %v2595_v1 = vld [vmem:[#allocation11 + $0x10] sm:$0xff] }
 0x11a   : > { %v2860_v8 = vpop.eup %2859  ;;  %2861 = vrsqrt.f32 %v755_v5  ;;  %v824_v30 = vadd.f32 %v2846_v22, %v815_v21  ;;  %vm784_vm14 = vmor %vm782_vm13, %vm783_vm11  ;;  %vm802_vm15 = vweird.f32 %v755_v5  ;;  %1697 = vmatpush.bf16.msra.mxu3 %v2607_v60  ;;  %v2636_v21 = vld [vmem:[#allocation11 + $0x158] sm:$0xff]  ;;  %v3761_v18 = vperm.slane %v3722_v49, 0  ;;  %v2611_v49 = vld [vmem:[#allocation11 + $0x90] sm:$0xff] }
 0x11b   : > { %v771_v12 = vmul.f32 %v2856_v54, %v770_v6  ;;  %v778_v14 = vmul.f32 %v2858_v2, %v777_v7  ;;  %v787_v15 = vmul.f32 %v2860_v8, %v754_v55  ;;  %vm793_vm10 = vweird.f32 %v2860_v8  ;;  %v2598_v55 = vld [vmem:[#allocation11 + $0x28] sm:$0xff]  ;;  %1754 = vmatpush.bf16.msrb.mxu0 %v2631_v61  ;;  %v2612_v61 = vld [vmem:[#allocation11 + $0x98] sm:$0xff] }
 0x11c   : > { %vm794_vm12 = vmor %vm792_vm9, %vm793_vm10  ;;  %1773 = vmatpush.bf16.msrb.mxu1 %v2639_v62  ;;  %v2638_v7 = vld [vmem:[#allocation11 + $0x168] sm:$0xff]  ;;  %v2623_v62 = vld [vmem:[#allocation11 + $0xf0] sm:$0xff] }
 0x11d   : > { %v779_v9 = vmul.f32 0.5, %v778_v14  ;;  %v788_v4 = vmul.f32 %v2860_v8, %v787_v15  ;;  %v775_v19 = vsel %vm774_vm8, %v2856_v54, %v771_v12  ;;  %v2599_v54 = vld [vmem:[#allocation11 + $0x30] sm:$0xff]  ;;  %v2605_v12 = vld [vmem:[#allocation11 + $0x60] sm:$0xff] }
 0x11e   : > { %v807_v20 = vmul.f32 %v775_v19, %v747_v17  ;;  %1678 = vmatpush.bf16.msra.mxu2 %v2599_v54  ;;  %v2629_v14 = vld [vmem:[#allocation11 + $0x120] sm:$0xff] }
 0x11f   : > { %v780_v23 = vsub.f32 1.5, %v779_v9  ;;  %v789_v24 = vmul.f32 0.5, %v788_v4  ;;  %1755 = vmatpush.bf16.msrb.mxu0 %v2630_v3  ;;  %v2637_v15 = vld [vmem:[#allocation11 + $0x160] sm:$0xff]  ;;  %v2604_v9 = vld [vmem:[#allocation11 + $0x58] sm:$0xff] }
 0x120   : > { %v2862_v25 = vpop.eup %2861  ;;  %v816_v26 = vmul.f32 %v2845_v63, %v807_v20  ;;  %1774 = vmatpush.bf16.msrb.mxu1 %v2638_v7  ;;  %v2593_v17 = vld [vmem:[#allocation11] sm:$0xff]  ;;  %v2628_v4 = vld [vmem:[#allocation11 + $0x118] sm:$0xff] }
 0x121   : > { %v790_v27 = vsub.f32 1.5, %v789_v24  ;;  %v797_v28 = vmul.f32 %v2862_v25, %v755_v5  ;;  %v781_v33 = vmul.f32 %v2858_v2, %v780_v23  ;;  %vm803_vm2 = vweird.f32 %v2862_v25 }
 0x122   : > { %v825_v31 = vadd.f32 %v2846_v22, %v816_v26  ;;  %vm804_vm3 = vmor %vm802_vm15, %vm803_vm2  ;;  %1679 = vmatpush.bf16.msra.mxu2 %v2598_v55  ;;  %v2603_v26 = vld [vmem:[#allocation11 + $0x50] sm:$0xff] }
 0x123   : > { %v791_v13 = vmul.f32 %v2860_v8, %v790_v27  ;;  %v798_v34 = vmul.f32 %v2862_v25, %v797_v28  ;;  %v785_v38 = vsel %vm784_vm14, %v2858_v2, %v781_v33  ;;  %v2606_v2 = vld [vmem:[#allocation11 + $0x68] sm:$0xff]  ;;  %1756 = vmatpush.bf16.msrb.mxu0 %v2629_v14  ;;  %v2627_v28 = vld [vmem:[#allocation11 + $0x110] sm:$0xff] }
 0x124   : > { %v829_v29 = vpack.c.bf16 %v825_v31, %v824_v30  ;;  %v808_v42 = vmul.f32 %v785_v38, %v748_v39  ;;  %1698 = vmatpush.bf16.msra.mxu3 %v2606_v2  ;;  %1775 = vmatpush.bf16.msrb.mxu1 %v2637_v15  ;;  %v2635_v30 = vld [vmem:[#allocation11 + $0x150] sm:$0xff]  ;;  %v2602_v33 = vld [vmem:[#allocation11 + $0x48] sm:$0xff]  ;;  %v1082_v38 = vlaneseq }
 0x125   : > { %v795_v35 = vsel %vm794_vm12, %v2860_v8, %v791_v13  ;;  %v799_v41 = vmul.f32 0.5, %v798_v34  ;;  %v2615_v31 = vld [vmem:[#allocation11 + $0xb0] sm:$0xff]  ;;  %v2626_v13 = vld [vmem:[#allocation11 + $0x108] sm:$0xff] }
 0x126   : > { %942 = vmatmul.bf16.vlgmr.msra.gmra.mxu0 %v829_v29  ;;  %965 = vmatmul.bf16.vlgmr.msra.gmra.mxu1 %v829_v29  ;;  %v809_v40 = vmul.f32 %v795_v35, %v749_v37  ;;  %v817_v45 = vmul.f32 %v2845_v63, %v808_v42  ;;  %v2634_v35 = vld [vmem:[#allocation11 + $0x148] sm:$0xff]  ;;  %v2601_v42 = vld [vmem:[#allocation11 + $0x40] sm:$0xff] }
 0x127   : > { %v800_v44 = vsub.f32 1.5, %v799_v41  ;;  %1680 = vmatpush.bf16.msra.mxu2 %v2597_v56  ;;  %1757 = vmatpush.bf16.msrb.mxu0 %v2628_v4  ;;  %v2614_v41 = vld [vmem:[#allocation11 + $0xa8] sm:$0xff] }
 0x128   : > { %v818_v43 = vmul.f32 %v2845_v63, %v809_v40  ;;  %v826_v48 = vadd.f32 %v2846_v22, %v817_v45  ;;  %1699 = vmatpush.bf16.msra.mxu3 %v2605_v12  ;;  %1776 = vmatpush.bf16.msrb.mxu1 %v2636_v21 }
 0x129   : > { %v801_v47 = vmul.f32 %v2862_v25, %v800_v44 }
 0x12a   : > { %v827_v46 = vadd.f32 %v2846_v22, %v818_v43  ;;  %v2625_v43 = vld [vmem:[#allocation11 + $0x100] sm:$0xff] }
 0x12b   : > { %v805_v50 = vsel %vm804_vm3, %v2862_v25, %v801_v47  ;;  %1681 = vmatpush.bf16.msra.mxu2 %v2596_v59  ;;  %v2616_v25 = vld [vmem:[#allocation11 + $0xb8] sm:$0xff]  ;;  %1758 = vmatpush.bf16.msrb.mxu0 %v2627_v28 }
 0x12c   : > { %v830_v36 = vpack.c.bf16 %v827_v46, %v826_v48  ;;  %v810_v11 = vmul.f32 %v805_v50, %v750_v16  ;;  %1700 = vmatpush.bf16.msra.mxu3 %v2604_v9  ;;  %1777 = vmatpush.bf16.msrb.mxu1 %v2635_v30  ;;  %v2633_v46 = vld [vmem:[#allocation11 + $0x140] sm:$0xff]  ;;  %v3747_v48 = vshrl.u32 %v1082_v38, 7 }
 0x12d   : > { %v2613_v50 = vld [vmem:[#allocation11 + $0xa0] sm:$0xff] }
 0x12e   : > { %v819_v32 = vmul.f32 %v2845_v63, %v810_v11  ;;  %v2594_v63 = vld [vmem:[#allocation11 + $0x8] sm:$0xff] }
 0x12f   : > { %1682 = vmatpush.bf16.msra.mxu2 %v2595_v1  ;;  %1759 = vmatpush.bf16.msrb.mxu0 %v2626_v13 }
 0x130   : > { %v828_v51 = vadd.f32 %v2846_v22, %v819_v32  ;;  %1701 = vmatpush.bf16.msra.mxu3 %v2603_v26  ;;  %1778 = vmatpush.bf16.msrb.mxu1 %v2634_v35 }
 0x132   : > { %v831_v52 = vpack.c.bf16 %v828_v51, %v828_v51  ;;  %v1084_v51 = vadd.s32 8, %v3747_v48 }
 0x133   : > { %1683 = vmatpush.bf16.msra.mxu2 %v2594_v63  ;;  %1760 = vmatpush.bf16.msrb.mxu0 %v2625_v43 }
 0x134   : > { %1702 = vmatpush.bf16.msra.mxu3 %v2602_v33  ;;  %1779 = vmatpush.bf16.msrb.mxu1 %v2633_v46 }
 0x136   : > { %947 = vmatmul.bf16.gmra.mxu0 %v830_v36  ;;  %970 = vmatmul.bf16.gmra.mxu1 %v830_v36  ;;  %v3749_v36 = vstv %s2299_s7  ;;  %s2015_s7 = sadd.s32 %s2660_s25, %s2567_s23 }
 0x137   : > { %1684 = vmatpush.bf16.msra.mxu2 %v2593_v17  ;;  %v3758_v55 = vadd.s32 %v3749_v36, %v3747_v48  ;;  %v1090_v60 = vadd.s32 %v3749_v36, %v1084_v51  ;;  %s2568_s2 = sshll.u32 %s2015_s7, 3 }
 0x138   : > { %1703 = vmatpush.bf16.msra.mxu3 %v2601_v42  ;;  %v2609_v42 = vld [vmem:[#allocation11 + $0x80] sm:$0xff]  ;;  %s2017_s11 = scalar_lea.hbm %s4153_s3, %s2568_s2 }
 0x139   : > { %vm1094_vm5 = vcmp.ge.s32.totalorder %v3758_v55, 0  ;;  %vm1099_vm7 = vcmp.lt.s32.totalorder %v3758_v55, 72  ;;  %vm1095_vm9 = vcmp.ge.s32.totalorder %v1090_v60, 0  ;;  %vm1100_vm11 = vcmp.lt.s32.totalorder %v1090_v60, 72  ;;  %s2020_s10 = sshll.u32 %s2017_s11, 4  ;;  %s2021_s10 = int_to_ptr.hbm [resolvable:$true] %s2020_s10 }
 0x13a   : > { %vm3802_vm2 = vmand %vm1095_vm9, %vm1100_vm11  ;;  %s3127_s18 = sshra.s32 %s2021_s10, 4  ;;  %s3128_s18 = int_to_ptr.hbm [resolvable:$true] %s3127_s18 }
 0x13b   : > { %1715 = vmatpush.bf16.msrb.mxu2 %v2616_v25  ;;  %vm3812_vm3 = vmand %vm1094_vm5, %vm1099_vm7  ;;  %vm1129_vm5 = vcmask 1046528   ;;  %vm1170_vm7 = vcmask 1043456   ;;  %p3134_p2 = scmp.lt.s32.totalorder %s3128_s18, %s4153_s3 }
 0x13f   : > { %1716 = vmatpush.bf16.msrb.mxu2 %v2615_v31  ;;  %v1086_v31 = vadd.s32 24, %v3747_v48 }
 0x141   : > { %v3822_v46 = vadd.s32 %v3749_v36, %v1086_v31 }
 0x143   : > { %1717 = vmatpush.bf16.msrb.mxu2 %v2614_v41 }
 0x146   : > { %952 = vmatmul.bf16.gmra.mxu0 %v831_v52  ;;  %975 = vmatmul.bf16.gmra.mxu1 %v831_v52  ;;  %v2624_v52 = vld [vmem:[#allocation11 + $0xf8] sm:$0xff] }
 0x147   : > { %1718 = vmatpush.bf16.msrb.mxu2 %v2613_v50  ;;  %1734 = vmatpush.bf16.msrb.mxu3 %v2624_v52 }
 0x14b   : > { %1719 = vmatpush.bf16.msrb.mxu2 %v2612_v61  ;;  %1735 = vmatpush.bf16.msrb.mxu3 %v2623_v62 }
 0x14f   : > { %1720 = vmatpush.bf16.msrb.mxu2 %v2611_v49  ;;  %v2618_v49 = vld [vmem:[#allocation11 + $0xc8] sm:$0xff] }
 0x1a3   : > { %v3727_v5 = vpop.f32.mrf.mxu0  ;;  %v966_v6 = vpop.f32.mrf.mxu1 }
 0x1a4   : > { %v967_v8 = vadd.f32 %v966_v6, %v3725_v0  ;;  %v2622_v6 = vld [vmem:[#allocation11 + $0xe8] sm:$0xff] }
 0x1a5   : > { %1736 = vmatpush.bf16.msrb.mxu3 %v2622_v6 }
 0x1a6   : > { %v2293_v10 = vmul.f32 -1.442695, %v967_v8 }
 0x1a8   : > { %2863 = vpow2.f32 %v2293_v10  ;;  %v944_v10 = vadd.f32 %v3727_v5, %v3761_v18 }
 0x1ab   : > { %v3730_v19 = vpop.f32.mrf.mxu0  ;;  %v968_v20 = vpop.f32.mrf.mxu1 }
 0x1ac   : > { %v969_v22 = vadd.f32 %v968_v20, %v3725_v0  ;;  %v946_v20 = vadd.f32 %v3730_v19, %v3761_v18 }
 0x1ae   : > { %v2864_v23 = vpop.eup %2863  ;;  %v2294_v24 = vmul.f32 -1.442695, %v969_v22  ;;  %v1085_v22 = vadd.s32 16, %v3747_v48 }
 0x1af   : > { %v3733_v27 = vadd.f32 1.0, %v2864_v23  ;;  %v2610_v23 = vld [vmem:[#allocation11 + $0x88] sm:$0xff] }
 0x1b0   : > { %2865 = vpow2.f32 %v2294_v24  ;;  %v2621_v24 = vld [vmem:[#allocation11 + $0xe0] sm:$0xff]  ;;  %1721 = vmatpush.bf16.msrb.mxu2 %v2610_v23  ;;  %v2646_v23 = vld [vmem:[#allocation11 + $0x1a8] sm:$0xff] }
 0x1b1   : > { %2867 = vrcp.f32 %v3733_v27  ;;  %v1011_v3 = vand.u32 2147483648, %v3733_v27  ;;  %vm1005_vm6 = vweird.f32 %v3733_v27  ;;  %v1009_v8 = vand.u32 2147483647, %v3733_v27  ;;  %1737 = vmatpush.bf16.msrb.mxu3 %v2621_v24  ;;  %v2617_v24 = vld [vmem:[#allocation11 + $0xc0] sm:$0xff] }
 0x1b3   : > { %v3736_v29 = vpop.f32.mrf.mxu0  ;;  %v971_v34 = vpop.f32.mrf.mxu1  ;;  %v1012_v21 = vor.u32 1.1754944e-38, %v1011_v3  ;;  %vm1010_vm12 = vcmp.eq.f32.partialorder %v1009_v8, 8.507059e+37  ;;  %v2647_v3 = vld [vmem:[#allocation11 + $0x1b0] sm:$0xff] }
 0x1b4   : > { %v972_v37 = vadd.f32 %v971_v34, %v3725_v0  ;;  %v949_v51 = vadd.f32 %v3736_v29, %v3761_v18  ;;  %1722 = vmatpush.bf16.msrb.mxu2 %v2609_v42 }
 0x1b6   : > { %v2866_v39 = vpop.eup %2865  ;;  %v2295_v40 = vmul.f32 -1.442695, %v972_v37 }
 0x1b7   : > { %v3740_v44 = vpop.eup %2867  ;;  %v3742_v45 = vadd.f32 1.0, %v2866_v39 }
 0x1b8   : > { %v1001_v47 = vmul.f32 %v3740_v44, %v3733_v27  ;;  %2869 = vpow2.f32 %v2295_v40  ;;  %vm1006_vm4 = vweird.f32 %v3740_v44  ;;  %v1091_v40 = vadd.s32 %v3749_v36, %v1085_v22 }
 0x1b9   : > { %2871 = vrcp.f32 %v3742_v45  ;;  %vm3781_vm8 = vmor %vm1005_vm6, %vm1006_vm4  ;;  %v1024_v15 = vand.u32 2147483647, %v3742_v45  ;;  %v1026_v17 = vand.u32 2147483648, %v3742_v45  ;;  %vm1020_vm13 = vweird.f32 %v3742_v45 }
 0x1ba   : > { %v1002_v16 = vsub.f32 1.0, %v1001_v47  ;;  %vm2524_vm4 = vmpackc.low %vm3802_vm2, %vm3812_vm3  ;;  %v2620_v47 = vld [vmem:[#allocation11 + $0xd8] sm:$0xff]  ;;  %vm1096_vm9 = vcmp.ge.s32.totalorder %v1091_v40, 0 }
 0x1bb   : > { %v3751_v11 = vpop.f32.mrf.mxu0  ;;  %v973_v32 = vpop.f32.mrf.mxu1  ;;  %v1027_v19 = vor.u32 1.1754944e-38, %v1026_v17  ;;  %vm1025_vm15 = vcmp.eq.f32.partialorder %v1024_v15, 8.507059e+37  ;;  %1738 = vmatpush.bf16.msrb.mxu3 %v2620_v47 }
 0x1bc   : > { %v974_v53 = vadd.f32 %v973_v32, %v3725_v0  ;;  %v1003_v54 = vmul.f32 %v3740_v44, %v1002_v16 }
 0x1be   : > { %v2870_v56 = vpop.eup %2869  ;;  %v2296_v57 = vmul.f32 -1.442695, %v974_v53  ;;  %v1004_v2 = vadd.f32 %v3740_v44, %v1003_v54 }
 0x1bf   : > { %v2872_v58 = vpop.eup %2871  ;;  %v3763_v59 = vadd.f32 1.0, %v2870_v56 }
 0x1c0   : > { %v1016_v1 = vmul.f32 %v2872_v58, %v3742_v45  ;;  %2873 = vpow2.f32 %v2296_v57  ;;  %v1008_v5 = vsel %vm3781_vm8, %v3740_v44, %v1004_v2  ;;  %vm1021_vm10 = vweird.f32 %v2872_v58  ;;  %v2648_v57 = vld [vmem:[#allocation11 + $0x1b8] sm:$0xff] }
 0x1c1   : > { %2875 = vrcp.f32 %v3763_v59  ;;  %v1013_v30 = vsel %vm1010_vm12, %v1012_v21, %v1008_v5  ;;  %vm1022_vm14 = vmor %vm1020_vm13, %vm1021_vm10  ;;  %v1041_v43 = vand.u32 2147483648, %v3763_v59  ;;  %v1039_v50 = vand.u32 2147483647, %v3763_v59 }
 0x1c2   : > { %v1017_v7 = vsub.f32 1.0, %v1016_v1  ;;  %v1075_v38 = vmul.f32 %v1013_v30, %v944_v10  ;;  %vm1035_vm8 = vweird.f32 %v3763_v59  ;;  %vm1101_vm10 = vcmp.lt.s32.totalorder %v1091_v40, 72 }
 0x1c3   : > { %v3777_v63 = vpop.f32.mrf.mxu0  ;;  %v976_v12 = vpop.f32.mrf.mxu1  ;;  %v1042_v55 = vor.u32 1.1754944e-38, %v1041_v43  ;;  %vm1097_vm12 = vcmp.ge.s32.totalorder %v3822_v46, 0  ;;  %vm1040_vm13 = vcmp.eq.f32.partialorder %v1039_v50, 8.507059e+37  ;;  %v1087_v1 = vadd.s32 32, %v3747_v48  ;;  %v2645_v43 = vld [vmem:[#allocation11 + $0x1a0] sm:$0xff] }
 0x1c4   : > { %v977_v9 = vadd.f32 %v976_v12, %v3725_v0  ;;  %v1018_v4 = vmul.f32 %v2872_v58, %v1017_v7  ;;  %v3842_v61 = vsel %vm3812_vm3, %v1075_v38, 0.0 }
 0x1c5   : > { %v1130_v48 = vrot.slane %v3842_v61, 1  ;;  %v1171_v12 = vrot.slane %v3842_v61, 4  ;;  %v1184_v15 = vrot.slane %v3842_v61, 5  ;;  %v1093_v42 = vadd.s32 %v3749_v36, %v1087_v1 }
 0x1c6   : > { %v2874_v25 = vpop.eup %2873  ;;  %v2297_v26 = vmul.f32 -1.442695, %v977_v9  ;;  %v1019_v0 = vadd.f32 %v2872_v58, %v1018_v4  ;;  %v1198_v40 = vrot.slane %v3842_v61, 6 }
 0x1c7   : > { %v2876_v27 = vpop.eup %2875  ;;  %v3795_v28 = vadd.f32 1.0, %v2874_v25 }
 0x1c8   : > { %v1031_v33 = vmul.f32 %v2876_v27, %v3763_v59  ;;  %2877 = vpow2.f32 %v2297_v26  ;;  %v1023_v13 = vsel %vm1022_vm14, %v2872_v58, %v1019_v0  ;;  %vm1036_vm6 = vweird.f32 %v2876_v27  ;;  %v2619_v58 = vld [vmem:[#allocation11 + $0xd0] sm:$0xff]  ;;  %vm3848_vm14 = vmand %vm1096_vm9, %vm1101_vm10 }
 0x1c9   : > { %2879 = vrcp.f32 %v3795_v28  ;;  %v1028_v35 = vsel %vm1025_vm15, %v1027_v19, %v1023_v13  ;;  %vm1037_vm11 = vmor %vm1035_vm8, %vm1036_vm6  ;;  %vm1102_vm15 = vcmp.lt.s32.totalorder %v3822_v46, 72  ;;  %1739 = vmatpush.bf16.msrb.mxu3 %v2619_v58  ;;  %v1056_v10 = vand.u32 2147483648, %v3795_v28 }
 0x1ca   : > { %v1032_v37 = vsub.f32 1.0, %v1031_v33  ;;  %v1076_v39 = vmul.f32 %v1028_v35, %v946_v20  ;;  %v1054_v4 = vand.u32 2147483647, %v3795_v28  ;;  %vm1050_vm3 = vweird.f32 %v3795_v28  ;;  %vm3897_vm8 = vmand %vm1097_vm12, %vm1102_vm15 }
 0x1cb   : > { %v955_v44 = vpop.f32.mrf.mxu0  ;;  %v978_v45 = vpop.f32.mrf.mxu1  ;;  %v1057_v0 = vor.u32 1.1754944e-38, %v1056_v10  ;;  %vm2527_vm10 = vmpackc.low %vm3897_vm8, %vm3848_vm14  ;;  %vm1098_vm12 = vcmp.ge.s32.totalorder %v1093_v42, 0 }
 0x1cc   : > { %v1033_v16 = vmul.f32 %v2876_v27, %v1032_v37  ;;  %v2525_v32 = vpack.c.bf16 %v1076_v39, %v1075_v38  ;;  %v3835_v29 = vsel %vm3802_vm2, %v1076_v39, 0.0  ;;  %v951_v37 = vadd.f32 %v3751_v11, %v3761_v18 }
 0x1cd   : > { %v1131_v8 = vrot.slane %v3835_v29, 1  ;;  %v1172_v14 = vrot.slane %v3835_v29, 4  ;;  %v1185_v9 = vrot.slane %v3835_v29, 5  ;;  %1740 = vmatpush.bf16.msrb.mxu3 %v2618_v49  ;;  %vm1055_vm6 = vcmp.eq.f32.partialorder %v1054_v4, 8.507059e+37  ;;  %v2641_v4 = vld [vmem:[#allocation11 + $0x180] sm:$0xff] }
 0x1ce   : > { %v2878_v52 = vpop.eup %2877  ;;  %v1034_v53 = vadd.f32 %v2876_v27, %v1033_v16  ;;  %2526 = vmatmul.msk.bf16.vlgmr.msra.gmra.mxu2 %vm2524_vm4, %v2525_v32 }
 0x1cf   : > { %v3828_v54 = vpop.eup %2879  ;;  %v3831_v56 = vadd.f32 1.0, %v2878_v52  ;;  %1791 = vmatpush.bf16.msra.mxu2 %v2648_v57  ;;  %v1132_v25 = vsel %vm1129_vm5, %v1130_v48, %v1131_v8  ;;  %v1173_v19 = vsel %vm1170_vm7, %v1171_v12, %v1172_v14  ;;  %v1186_v35 = vsel %vm673_vm0, %v1184_v15, %v1185_v9 }
 0x1d0   : > { %v1038_v60 = vsel %vm1037_vm11, %v2876_v27, %v1034_v53  ;;  %v1046_v59 = vmul.f32 %v3828_v54, %v3795_v28  ;;  %vm1051_vm2 = vweird.f32 %v3828_v54  ;;  %v954_v52 = vadd.f32 %v3777_v63, %v3761_v18 }
 0x1d1   : > { %v1043_v62 = vsel %vm1040_vm13, %v1042_v55, %v1038_v60  ;;  %2881 = vrcp.f32 %v3831_v56  ;;  %vm1052_vm4 = vmor %vm1050_vm3, %vm1051_vm2  ;;  %1741 = vmatpush.bf16.msrb.mxu3 %v2617_v24  ;;  %v1071_v44 = vand.u32 2147483648, %v3831_v56  ;;  %v1069_v46 = vand.u32 2147483647, %v3831_v56  ;;  %v2643_v55 = vld [vmem:[#allocation11 + $0x190] sm:$0xff] }
 0x1d2   : > { %v1047_v6 = vsub.f32 1.0, %v1046_v59  ;;  %v3853_v7 = vmul.f32 %v1043_v62, %v949_v51  ;;  %vm1065_vm11 = vweird.f32 %v3831_v56  ;;  %vm1103_vm13 = vcmp.lt.s32.totalorder %v1093_v42, 72  ;;  %v2644_v51 = vld [vmem:[#allocation11 + $0x198] sm:$0xff] }
 0x1d3   : > { %1792 = vmatpush.bf16.msra.mxu2 %v2647_v3  ;;  %v1072_v50 = vor.u32 1.1754944e-38, %v1071_v44  ;;  %vm1108_vm2 = vmand %vm1098_vm12, %vm1103_vm13  ;;  %v2642_v3 = vld [vmem:[#allocation11 + $0x188] sm:$0xff]  ;;  %v1144_v15 = vrot.slane %v3835_v29, 2  ;;  %v1157_v24 = vrot.slane %v3842_v61, 3 }
 0x1d4   : > { %v3864_v17 = vsel %vm3848_vm14, %v3853_v7, 0.0  ;;  %v1048_v5 = vmul.f32 %v3828_v54, %v1047_v6  ;;  %vm1070_vm14 = vcmp.eq.f32.partialorder %v1069_v46, 8.507059e+37 }
 0x1d5   : > { %v1133_v20 = vrot.slane %v3864_v17, 1  ;;  %v1174_v21 = vrot.slane %v3864_v17, 4  ;;  %v1187_v22 = vrot.slane %v3864_v17, 5  ;;  %v1146_v49 = vrot.slane %v3864_v17, 2 }
 0x1d6   : > { %v1049_v26 = vadd.f32 %v3828_v54, %v1048_v5 }
 0x1d7   : > { %v2882_v27 = vpop.eup %2881  ;;  %v1134_v30 = vsel %vm1129_vm5, %v1131_v8, %v1133_v20  ;;  %v1175_v31 = vsel %vm1170_vm7, %v1172_v14, %v1174_v21  ;;  %v1188_v33 = vsel %vm673_vm0, %v1185_v9, %v1187_v22  ;;  %1793 = vmatpush.bf16.msra.mxu2 %v2646_v23  ;;  %v1143_v9 = vrot.slane %v3842_v61, 2 }
 0x1d8   : > { %v1061_v13 = vmul.f32 %v2882_v27, %v3831_v56  ;;  %v1212_v34 = vpack.c.bf16 %v1134_v30, %v1132_v25  ;;  %v1215_v28 = vpack.c.bf16 %v1175_v31, %v1173_v19  ;;  %v1216_v38 = vpack.c.bf16 %v1188_v33, %v1186_v35 }
 0x1d9   : > { %v1053_v39 = vsel %vm1052_vm4, %v3828_v54, %v1049_v26  ;;  %vm1066_vm9 = vweird.f32 %v2882_v27  ;;  %v1147_v5 = vsel %vm699_vm1, %v1144_v15, %v1146_v49  ;;  %v1158_v23 = vrot.slane %v3835_v29, 3 }
 0x1da   : > { %v1062_v41 = vsub.f32 1.0, %v1061_v13  ;;  %1704 = vmatmul.bf16.vlgmr.msra.gmra.mxu3 %v1212_v34  ;;  %1761 = vmatmul.bf16.vlgmr.msrb.gmra.mxu0 %v1215_v28  ;;  %v1058_v11 = vsel %vm1055_vm6, %v1057_v0, %v1053_v39  ;;  %vm1067_vm15 = vmor %vm1065_vm11, %vm1066_vm9  ;;  %v1201_v35 = vrot.slane %v3864_v17, 6 }
 0x1db   : > { %1780 = vmatmul.bf16.vlgmr.msrb.gmra.mxu1 %v1216_v38  ;;  %v1078_v45 = vmul.f32 %v1058_v11, %v951_v37  ;;  %1794 = vmatpush.bf16.msra.mxu2 %v2645_v43  ;;  %v1199_v38 = vrot.slane %v3835_v29, 6 }
 0x1dc   : > { %v1063_v47 = vmul.f32 %v2882_v27, %v1062_v41 }
 0x1dd   : > { %v2528_v16 = vpack.c.bf16 %v1078_v45, %v3853_v7  ;;  %v3912_v32 = vsel %vm3897_vm8, %v1078_v45, 0.0 }
 0x1de   : > { %v1064_v36 = vadd.f32 %v2882_v27, %v1063_v47  ;;  %v1135_v57 = vrot.slane %v3912_v32, 1  ;;  %v1176_v58 = vrot.slane %v3912_v32, 4  ;;  %v1189_v60 = vrot.slane %v3912_v32, 5 }
 0x1df   : > { %2529 = vmatmul.msk.bf16.gmra.mxu2 %vm2527_vm10, %v2528_v16  ;;  %v1148_v30 = vrot.slane %v3912_v32, 2  ;;  %v1162_v34 = vrot.slane %v3912_v32, 3  ;;  %v1203_v44 = vrot.slane %v3912_v32, 6 }
 0x1e0   : > { %v1068_v53 = vsel %vm1067_vm15, %v2882_v27, %v1064_v36  ;;  %1795 = vmatpush.bf16.msra.mxu2 %v2644_v51  ;;  %v1136_v18 = vsel %vm1129_vm5, %v1133_v20, %v1135_v57  ;;  %v1177_v63 = vsel %vm1170_vm7, %v1174_v21, %v1176_v58  ;;  %v1190_v8 = vsel %vm673_vm0, %v1187_v22, %v1189_v60 }
 0x1e1   : > { %v1073_v54 = vsel %vm1070_vm14, %v1072_v50, %v1068_v53  ;;  %v1145_v20 = vsel %vm699_vm1, %v1143_v9, %v1144_v15  ;;  %v1160_v22 = vrot.slane %v3864_v17, 3  ;;  %v1149_v31 = vsel %vm699_vm1, %v1146_v49, %v1148_v30  ;;  %v2848_v9 = vld [vmem:[%s4149_s6] ss:$0 sm:$0xff]  ;;  %s2018_s6 = sshll.u32 %s649_s28, 4  ;;  %s2019_s6 = int_to_ptr.vmem [resolvable:$true] %s2018_s6 }
 0x1e2   : > { %v1079_v56 = vmul.f32 %v1073_v54, %v954_v52  ;;  %v1213_v21 = vpack.c.bf16 %v1147_v5, %v1145_v20 }
 0x1e4   : > { %v1123_v59 = vsel %vm1108_vm2, %v1079_v56, 0.0  ;;  %1796 = vmatpush.bf16.msra.mxu2 %v2643_v55  ;;  %v2847_v55 = vld [vmem:[%s4148_s13] ss:$0 sm:$0xff] }
 0x1e5   : > { %v1137_v62 = vrot.slane %v1123_v59, 1  ;;  %v1178_v1 = vrot.slane %v1123_v59, 4  ;;  %v1191_v2 = vrot.slane %v1123_v59, 5  ;;  %v1150_v26 = vrot.slane %v1123_v59, 2 }
 0x1e6   : > { %v1164_v13 = vrot.slane %v1123_v59, 3  ;;  %v1205_v43 = vrot.slane %v1123_v59, 6 }
 0x1e7   : > { %v1138_v6 = vsel %vm1129_vm5, %v1135_v57, %v1137_v62  ;;  %v1179_v7 = vsel %vm1170_vm7, %v1176_v58, %v1178_v1  ;;  %v1192_v10 = vsel %vm673_vm0, %v1189_v60, %v1191_v2  ;;  %vm1156_vm0 = vcmask 1044480   ;;  %v2656_v58 = vld [vmem:[#allocation13 + $0x38] sm:$0xff]  ;;  %v2655_v1 = vld [vmem:[#allocation13 + $0x30] sm:$0xff] }
 0x1e8   : > { %v1219_v48 = vpack.c.bf16 %v1138_v6, %v1136_v18  ;;  %v1222_v12 = vpack.c.bf16 %v1179_v7, %v1177_v63  ;;  %v1223_v14 = vpack.c.bf16 %v1192_v10, %v1190_v8  ;;  %1797 = vmatpush.bf16.msra.mxu2 %v2642_v3  ;;  %v1161_v25 = vsel %vm1156_vm0, %v1158_v23, %v1160_v22  ;;  %v2654_v6 = vld [vmem:[#allocation13 + $0x28] sm:$0xff] }
 0x1e9   : > { %v1159_v0 = vsel %vm1156_vm0, %v1157_v24, %v1158_v23  ;;  %v1151_v19 = vsel %vm699_vm1, %v1148_v30, %v1150_v26  ;;  %v1165_v28 = vsel %vm1156_vm0, %v1162_v34, %v1164_v13  ;;  %v1163_v37 = vsel %vm1156_vm0, %v1160_v22, %v1162_v34  ;;  %1976 = vmatpush.bf16.msra.mxu3 %v2656_v58  ;;  %v2652_v24 = vld [vmem:[#allocation13 + $0x18] sm:$0xff] }
 0x1ea   : > { %1709 = vmatmul.bf16.gmra.mxu3 %v1219_v48  ;;  %1766 = vmatmul.bf16.gmra.mxu0 %v1222_v12  ;;  %v1214_v27 = vpack.c.bf16 %v1161_v25, %v1159_v0  ;;  %v1220_v33 = vpack.c.bf16 %v1151_v19, %v1149_v31  ;;  %v1221_v39 = vpack.c.bf16 %v1165_v28, %v1163_v37  ;;  %vm1197_vm5 = vcmask 1041408   ;;  %v2653_v12 = vld [vmem:[#allocation13 + $0x20] sm:$0xff]  ;;  %v2651_v19 = vld [vmem:[#allocation13 + $0x10] sm:$0xff] }
 0x1eb   : > { %1785 = vmatmul.bf16.gmra.mxu1 %v1223_v14  ;;  %v1202_v41 = vsel %vm1197_vm5, %v1199_v38, %v1201_v35  ;;  %v1200_v42 = vsel %vm1197_vm5, %v1198_v40, %v1199_v38  ;;  %v1206_v45 = vsel %vm1197_vm5, %v1203_v44, %v1205_v43  ;;  %v1204_v47 = vsel %vm1197_vm5, %v1201_v35, %v1203_v44  ;;  %v2650_v38 = vld [vmem:[#allocation13 + $0x8] sm:$0xff]  ;;  %v2649_v43 = vld [vmem:[#allocation13] sm:$0xff] }
 0x1ec   : > { %1798 = vmatpush.bf16.msra.mxu2 %v2641_v4  ;;  %v1217_v11 = vpack.c.bf16 %v1202_v41, %v1200_v42  ;;  %v1224_v46 = vpack.c.bf16 %v1206_v45, %v1204_v47 }
 0x1ed   : > { %1977 = vmatpush.bf16.msra.mxu3 %v2655_v1 }
 0x1ef   : > { %1723 = vmatmul.bf16.vlgmr.msrb.gmra.mxu2 %v1213_v21  ;;  %v2849_v21 = vld [vmem:[%s4150_s24] ss:$0 sm:$0xff]  ;;  %s3129_s24 = scalar_lea.hbm %s3128_s18, 32 }
 0x1f0   : > { %p3130_p1 = scmp.ne.s32.totalorder %s3128_s18, %s3129_s24  ;;  %p3135_p7 = scmp.lt.s32.totalorder %s3133_s1, %s3129_s24 }
 0x1f1   : > { %1978 = vmatpush.bf16.msra.mxu3 %v2654_v6 }
 0x1f2   : > { %p3131_p3 = pnand %p3130_p1, %p3482_p13  ;;  %p3136_p4 = por %p3135_p7, %p3134_p2 }
 0x1f4   : > { %p3132_p12 = pneg %p3131_p3 }
 0x1f5   : > { %1979 = vmatpush.bf16.msra.mxu3 %v2653_v12 }
 0x1f6   : > { %p3137_p8 = pnand %p3136_p4, %p3132_p12 }
 0x1f9   : > { %1980 = vmatpush.bf16.msra.mxu3 %v2652_v24 }
 0x1fa   : > { %1742 = vmatmul.bf16.vlgmr.msrb.gmra.mxu3 %v1214_v27 }
 0x1fd   : > { %1981 = vmatpush.bf16.msra.mxu3 %v2651_v19 }
 0x1ff   : > { %1728 = vmatmul.bf16.gmra.mxu2 %v1220_v33 }
 0x201   : > { %1982 = vmatpush.bf16.msra.mxu3 %v2650_v38 }
 0x205   : > { %1983 = vmatpush.bf16.msra.mxu3 %v2649_v43 }
 0x20a   : > { %1747 = vmatmul.bf16.gmra.mxu3 %v1221_v39 }
 0x20f   : > { %1799 = vmatmul.bf16.vlgmr.msra.gmra.mxu2 %v1217_v11 }
 0x21f   : > { %1804 = vmatmul.bf16.gmra.mxu2 %v1224_v46 }
 0x251   : > { %v1686_v17 = vpop.f32.mrf.mxu2 }
 0x252   : > { %v1687_v57 = vadd.f32 %v2847_v55, %v1686_v17 }
 0x257   : > { %v1762_v59 = vpop.f32.mrf.mxu0 }
 0x258   : > { %v1781_v2 = vpop.f32.mrf.mxu1 }
 0x259   : > { %v1688_v16 = vpop.f32.mrf.mxu2 }
 0x25a   : > { %v1689_v49 = vadd.f32 %v2847_v55, %v1688_v16 }
 0x25d   : > { %v1705_v36 = vpop.f32.mrf.mxu3 }
 0x25e   : > { %v1706_v60 = vadd.f32 %v1705_v36, %v1687_v57 }
 0x25f   : > { %v1764_v48 = vpop.f32.mrf.mxu0 }
 0x260   : > { %v1783_v22 = vpop.f32.mrf.mxu1 }
 0x262   : > { %v1691_v29 = vpop.f32.mrf.mxu2 }
 0x263   : > { %v1692_v4 = vadd.f32 %v2847_v55, %v1691_v29 }
 0x265   : > { %v1707_v50 = vpop.f32.mrf.mxu3 }
 0x266   : > { %v1708_v7 = vadd.f32 %v1707_v50, %v1689_v49 }
 0x267   : > { %v1767_v34 = vpop.f32.mrf.mxu0 }
 0x268   : > { %v1786_v42 = vpop.f32.mrf.mxu1 }
 0x26a   : > { %v1693_v51 = vpop.f32.mrf.mxu2 }
 0x26b   : > { %v1694_v35 = vadd.f32 %v2847_v55, %v1693_v51 }
 0x26d   : > { %v1710_v52 = vpop.f32.mrf.mxu3 }
 0x26e   : > { %v1711_v25 = vadd.f32 %v1710_v52, %v1692_v4 }
 0x26f   : > { %v1769_v51 = vpop.f32.mrf.mxu0 }
 0x272   : > { %v1724_v61 = vpop.f32.mrf.mxu2 }
 0x273   : > { %v1725_v62 = vadd.f32 %v1724_v61, %v1706_v60 }
 0x275   : > { %v1712_v53 = vpop.f32.mrf.mxu3 }
 0x276   : > { %v1713_v39 = vadd.f32 %v1712_v53, %v1694_v35 }
 0x27a   : > { %v1726_v54 = vpop.f32.mrf.mxu2 }
 0x27b   : > { %v1727_v10 = vadd.f32 %v1726_v54, %v1708_v7  ;;  %v1788_v54 = vpop.f32.mrf.mxu1 }
 0x27d   : > { %v1743_v56 = vpop.f32.mrf.mxu3 }
 0x27e   : > { %v1744_v3 = vadd.f32 %v1743_v56, %v1725_v62 }
 0x280   : > { %v1763_v8 = vadd.f32 %v1762_v59, %v1744_v3 }
 0x282   : > { %v1729_v32 = vpop.f32.mrf.mxu2  ;;  %v1782_v15 = vadd.f32 %v1781_v2, %v1763_v8 }
 0x283   : > { %v1730_v27 = vadd.f32 %v1729_v32, %v1711_v25 }
 0x285   : > { %v1745_v18 = vpop.f32.mrf.mxu3 }
 0x286   : > { %v1746_v14 = vadd.f32 %v1745_v18, %v1727_v10 }
 0x288   : > { %v1765_v26 = vadd.f32 %v1764_v48, %v1746_v14 }
 0x28a   : > { %v1731_v63 = vpop.f32.mrf.mxu2  ;;  %v1784_v13 = vadd.f32 %v1783_v22, %v1765_v26 }
 0x28b   : > { %v1732_v44 = vadd.f32 %v1731_v63, %v1713_v39 }
 0x28d   : > { %v1748_v23 = vpop.f32.mrf.mxu3 }
 0x28e   : > { %v1749_v31 = vadd.f32 %v1748_v23, %v1730_v27 }
 0x290   : > { %v1768_v40 = vadd.f32 %v1767_v34, %v1749_v31 }
 0x292   : > { %v1800_v5 = vpop.f32.mrf.mxu2  ;;  %v1787_v16 = vadd.f32 %v1786_v42, %v1768_v40 }
 0x293   : > { %v1801_v20 = vadd.f32 %v1800_v5, %v1782_v15 }
 0x295   : > { %v1814_v0 = vmul.f32 %v2848_v9, %v1801_v20  ;;  %v1750_v11 = vpop.f32.mrf.mxu3 }
 0x296   : > { %v1751_v46 = vadd.f32 %v1750_v11, %v1732_v44 }
 0x297   : > { %v3960_v30 = vadd.f32 %v2849_v21, %v1814_v0 }
 0x298   : > { %v1770_v52 = vadd.f32 %v1769_v51, %v1751_v46  ;;  %v2850_v51 = vld [vmem:[%s4152_s9] ss:$0 sm:$0xff] }
 0x299   : > { %v2530_v33 = vmul.f32 -1.442695, %v3960_v30 }
 0x29a   : > { %v1802_v28 = vpop.f32.mrf.mxu2  ;;  %v1789_v32 = vadd.f32 %v1788_v54, %v1770_v52  ;;  %v2899_v54 = vld [vmem:[%s3619_s8] sm:$0xff] }
 0x29b   : > { %2883 = vpow2.f32 %v2530_v33  ;;  %v1803_v37 = vadd.f32 %v1802_v28, %v1784_v13 }
 0x29d   : > { %v1815_v41 = vmul.f32 %v2848_v9, %v1803_v37 }
 0x29f   : > { %v3963_v45 = vadd.f32 %v2849_v21, %v1815_v41 }
 0x2a1   : > { %v2884_v47 = vpop.eup %2883  ;;  %v2531_v17 = vmul.f32 -1.442695, %v3963_v45 }
 0x2a2   : > { %v1838_v36 = vadd.f32 1.0, %v2884_v47  ;;  %v1805_v29 = vpop.f32.mrf.mxu2 }
 0x2a3   : > { %2885 = vpow2.f32 %v2531_v17  ;;  %v1806_v50 = vadd.f32 %v1805_v29, %v1787_v16 }
 0x2a4   : > { %2887 = vrcp.f32 %v1838_v36  ;;  %v1853_v48 = vand.u32 2147483648, %v1838_v36  ;;  %vm1847_vm7 = vweird.f32 %v1838_v36  ;;  %v1851_v12 = vand.u32 2147483647, %v1838_v36 }
 0x2a5   : > { %v1816_v61 = vmul.f32 %v2848_v9, %v1806_v50 }
 0x2a6   : > { %v1854_v20 = vor.u32 1.1754944e-38, %v1853_v48  ;;  %vm1852_vm6 = vcmp.eq.f32.partialorder %v1851_v12, 8.507059e+37 }
 0x2a7   : > { %v3966_v53 = vadd.f32 %v2849_v21, %v1816_v61 }
 0x2a9   : > { %v2886_v55 = vpop.eup %2885  ;;  %v2532_v56 = vmul.f32 -1.442695, %v3966_v53 }
 0x2aa   : > { %v2888_v57 = vpop.eup %2887  ;;  %v1839_v58 = vadd.f32 1.0, %v2886_v55  ;;  %v1807_v60 = vpop.f32.mrf.mxu2 }
 0x2ab   : > { %v1843_v59 = vmul.f32 %v2888_v57, %v1838_v36  ;;  %2889 = vpow2.f32 %v2532_v56  ;;  %v1808_v62 = vadd.f32 %v1807_v60, %v1789_v32  ;;  %vm1848_vm1 = vweird.f32 %v2888_v57 }
 0x2ac   : > { %2891 = vrcp.f32 %v1839_v58  ;;  %vm1849_vm3 = vmor %vm1847_vm7, %vm1848_vm1  ;;  %v1868_v15 = vand.u32 2147483648, %v1839_v58  ;;  %v1866_v4 = vand.u32 2147483647, %v1839_v58  ;;  %vm1862_vm8 = vweird.f32 %v1839_v58 }
 0x2ad   : > { %v1844_v1 = vsub.f32 1.0, %v1843_v59  ;;  %v1817_v2 = vmul.f32 %v2848_v9, %v1808_v62  ;;  %v2901_v59 = vld [vmem:[%s3619_s8 + $0x10] sm:$0xff] }
 0x2ae   : > { %v1869_v25 = vor.u32 1.1754944e-38, %v1868_v15  ;;  %vm1867_vm10 = vcmp.eq.f32.partialorder %v1866_v4, 8.507059e+37 }
 0x2af   : > { %v1845_v3 = vmul.f32 %v2888_v57, %v1844_v1  ;;  %v3969_v18 = vadd.f32 %v2849_v21, %v1817_v2 }
 0x2b1   : > { %v2890_v63 = vpop.eup %2889  ;;  %v2533_v49 = vmul.f32 -1.442695, %v3969_v18  ;;  %v1846_v8 = vadd.f32 %v2888_v57, %v1845_v3  ;;  %v2902_v3 = vld [vmem:[%s3619_s8 + $0x18] sm:$0xff] }
 0x2b2   : > { %v2892_v6 = vpop.eup %2891  ;;  %v1840_v7 = vadd.f32 1.0, %v2890_v63 }
 0x2b3   : > { %v1858_v10 = vmul.f32 %v2892_v6, %v1839_v58  ;;  %2893 = vpow2.f32 %v2533_v49  ;;  %v1850_v9 = vsel %vm1849_vm3, %v2888_v57, %v1846_v8  ;;  %vm1863_vm4 = vweird.f32 %v2892_v6  ;;  %v2900_v57 = vld [vmem:[%s3619_s8 + $0x8] sm:$0xff] }
 0x2b4   : > { %2895 = vrcp.f32 %v1840_v7  ;;  %v1855_v24 = vsel %vm1852_vm6, %v1854_v20, %v1850_v9  ;;  %vm1864_vm9 = vmor %vm1862_vm8, %vm1863_vm4  ;;  %v1883_v39 = vand.u32 2147483648, %v1840_v7  ;;  %vm1877_vm12 = vweird.f32 %v1840_v7 }
 0x2b5   : > { %v1859_v14 = vsub.f32 1.0, %v1858_v10  ;;  %v1902_v31 = vmul.f32 %v1855_v24, %v3960_v30  ;;  %v1881_v40 = vand.u32 2147483647, %v1840_v7 }
 0x2b6   : > { %v1884_v44 = vor.u32 1.1754944e-38, %v1883_v39 }
 0x2b7   : > { %v1860_v5 = vmul.f32 %v2892_v6, %v1859_v14  ;;  %vm1882_vm14 = vcmp.eq.f32.partialorder %v1881_v40, 8.507059e+37 }
 0x2b9   : > { %v2894_v21 = vpop.eup %2893  ;;  %v1861_v22 = vadd.f32 %v2892_v6, %v1860_v5 }
 0x2ba   : > { %v2896_v23 = vpop.eup %2895  ;;  %v1841_v26 = vadd.f32 1.0, %v2894_v21 }
 0x2bb   : > { %v1865_v0 = vsel %vm1864_vm9, %v2892_v6, %v1861_v22  ;;  %v1873_v27 = vmul.f32 %v2896_v23, %v1840_v7  ;;  %vm1878_vm11 = vweird.f32 %v2896_v23 }
 0x2bc   : > { %v1870_v19 = vsel %vm1867_vm10, %v1869_v25, %v1865_v0  ;;  %2897 = vrcp.f32 %v1841_v26  ;;  %vm1879_vm13 = vmor %vm1877_vm12, %vm1878_vm11  ;;  %v1898_v42 = vand.u32 2147483648, %v1841_v26  ;;  %v1896_v30 = vand.u32 2147483647, %v1841_v26 }
 0x2bd   : > { %v1903_v33 = vmul.f32 %v1870_v19, %v3963_v45  ;;  %v1874_v13 = vsub.f32 1.0, %v1873_v27  ;;  %vm1892_vm2 = vweird.f32 %v1841_v26 }
 0x2be   : > { %v1899_v46 = vor.u32 1.1754944e-38, %v1898_v42  ;;  %vm1897_vm5 = vcmp.eq.f32.partialorder %v1896_v30, 8.507059e+37 }
 0x2bf   : > { %v1906_v34 = vpack.c.bf16 %v1903_v33, %v1902_v31  ;;  %v1875_v28 = vmul.f32 %v2896_v23, %v1874_v13 }
 0x2c1   : > { %1984 = vmatmul.bf16.vlgmr.msra.gmra.mxu3 %v1906_v34  ;;  %v1876_v37 = vadd.f32 %v2896_v23, %v1875_v28 }
 0x2c2   : > { %v2898_v35 = vpop.eup %2897 }
 0x2c3   : > { %v1888_v38 = vmul.f32 %v2898_v35, %v1841_v26  ;;  %v1880_v11 = vsel %vm1879_vm13, %v2896_v23, %v1876_v37  ;;  %vm1893_vm15 = vweird.f32 %v2898_v35 }
 0x2c4   : > { %v1885_v47 = vsel %vm1882_vm14, %v1884_v44, %v1880_v11  ;;  %vm1894_vm0 = vmor %vm1892_vm2, %vm1893_vm15 }
 0x2c5   : > { %v1889_v41 = vsub.f32 1.0, %v1888_v38  ;;  %v1904_v36 = vmul.f32 %v1885_v47, %v3966_v53 }
 0x2c7   : > { %v1890_v43 = vmul.f32 %v2898_v35, %v1889_v41 }
 0x2c9   : > { %v1891_v45 = vadd.f32 %v2898_v35, %v1890_v43 }
 0x2cb   : > { %v1895_v17 = vsel %vm1894_vm0, %v2898_v35, %v1891_v45 }
 0x2cc   : > { %v1900_v16 = vsel %vm1897_vm5, %v1899_v46, %v1895_v17 }
 0x2cd   : > { %v1905_v29 = vmul.f32 %v1900_v16, %v3969_v18 }
 0x2cf   : > { %v1907_v50 = vpack.c.bf16 %v1905_v29, %v1904_v36 }
 0x2d1   : > { %1989 = vmatmul.bf16.gmra.mxu3 %v1907_v50 }
 0x344   : > { %v1985_v52 = vpop.f32.mrf.mxu3 }
 0x345   : > { %v1986_v61 = vadd.f32 %v2850_v51, %v1985_v52 }
 0x347   : > { %v1995_v55 = vadd.f32 %v2899_v54, %v1986_v61 }
 0x349   : > { %1999 = vst [vmem:[%s649_s28] sm:$0xff] %v1995_v55 }
 0x34c   : > { %v1987_v56 = vpop.f32.mrf.mxu3 }
 0x34d   : > { %v1988_v32 = vadd.f32 %v2850_v51, %v1987_v56 }
 0x34f   : > { %v1996_v53 = vadd.f32 %v2900_v57, %v1988_v32 }
 0x351   : > { %2000 = vst [vmem:[%s649_s28 + $0x8] sm:$0xff] %v1996_v53 }
 0x354   : > { %v1990_v58 = vpop.f32.mrf.mxu3 }
 0x355   : > { %v1991_v60 = vadd.f32 %v2850_v51, %v1990_v58 }
 0x357   : > { %v1997_v62 = vadd.f32 %v2901_v59, %v1991_v60 }
 0x359   : > { %2001 = vst [vmem:[%s649_s28 + $0x10] sm:$0xff] %v1997_v62 }
 0x35c   : > { %v1992_v1 = vpop.f32.mrf.mxu3 }
 0x35d   : > { %v1993_v2 = vadd.f32 %v2850_v51, %v1992_v1 }
 0x35f   : > { %v1998_v18 = vadd.f32 %v2902_v3, %v1993_v2 }
 0x361   : > { %2002 = vst [vmem:[%s649_s28 + $0x18] sm:$0xff] %v1998_v18 }
 0x362   : > { %3140 = shalt.err (!%p3137_p8)
}
 0x363   : > { %s3286_s20 = smov 128   ;;  %s3287_s19 = smov 8  }
 0x364   : > { %2683 = dma.vmem_to_hbm [thread:$0]  (%p3482_p13), %s2019_s6, 512, %s2021_s10, %s2004_s29, %s3286_s20, %s3286_s20, %s3287_s19  }
 0x365 PF: > { %s4155_s8 = sld [smem:[#allocation21_spill]]  ;;  %p2721_p9 = scmp.ge.s32.totalorder %s3275_s21, 2 }
 0x367   : > { %p2709_p11 = pnand %p2721_p9, %p3486_p0 }
 0x369   : > { %p2710_p10 = pneg %p2709_p11 }
 0x36b   : > { %s2035_s23 = sand.u32 1, %s4155_s8  }
 0x36c   : > { %s2036_s7 = scalar_lea.sflag [#allocation4], %s2035_s23 }
 0x36d   : > { %3218 = dma.done.wait (%p2710_p10), %s2036_s7, 512  }
 0x36e   : > { %3220 = vsyncadd (%p2710_p10), %s2036_s7, 4294966784  ;;  %s34_s21 = sadd.s32 1, %s3275_s21   ;;  %s4158_s28 = sld [smem:[#allocation22_spill]] }
 0x36f   : > { %p4006_p6 = scmp.ge.s32.totalorder %s34_s21, 8   ;;  %s4159_s12 = smov %s3561_s14 }
 0x370   : > { %s4160_s17 = sld [smem:[#allocation25_spill]]  ;;  %s4164_s25 = smov %s3227_s26 }
 0x371   : > { %s4161_s18 = sld [smem:[#allocation26_spill]]  ;;  %s4165_s26 = smov %s3231_s27 }
 0x372   : > { %s4162_s19 = sld [smem:[#allocation31_spill]]  ;;  %s4166_s27 = smov %s3595_s4 }
 0x373   : > { %s4163_s20 = sld [smem:[#allocation32_spill]]  ;;  %s4167_s29 = smov %s3243_s30 }
 0x374   : > { %s4168_s30 = smov %s3558_s5  ;;  %s4169_s14 = smov %s3251_s15 }
 0x375   : > { %s4170_s15 = smov %s3255_s16  ;;  %s4171_s16 = smov %s4159_s12 }
 0x376   :  { %33 = sbr.rel (!%p4006_p6) target bundleno = 29 (0x1d), region = 157 }
 0x37b   :  { %2042 = vsyncpa [#allocation3], 1 }
 0x37c   :  { %2044 = vsyncpa [#allocation3 + $0x1], 1 }
 0x37d   :  { %2045 = vsyncpa [#allocation6], 1 }
 0x37e   :  { %2047 = vsyncpa [#allocation6 + $0x1], 1 }
 0x37f   :  { %2048 = vsyncpa [#allocation9], 1 }
 0x380   :  { %2049 = vsyncpa [#allocation12], 1 }
 0x381   :  { %2050 = vsyncpa [#allocation4], 1 }
 0x382   :  { %2052 = vsyncpa [#allocation4 + $0x1], 1 }

</bundles_post_ra>
